<compile_context>
chip_gen: v6e
topology: v6e:2x2x1
jax: 0.10.0
libtpu: 0.0.40
codegen_flags: <defaults>
</compile_context>

<pallas_src>
import functools

import jax
import jax.numpy as jnp
from jax import lax
from jax.experimental import pallas as pl
from jax.experimental.pallas import tpu as pltpu


# ----------------------------------------------------------------------------
# Kernel: one encoder layer for a (Bt, S, D) block of batch elements.
# ----------------------------------------------------------------------------
def _encoder_layer_kernel(
    x_ref, bias_ref,
    wqkv_ref, bqkv_ref, wo_ref, bo_ref,
    g1_ref, be1_ref,
    w1_ref, b1_ref, w2_ref, b2_ref,
    g2_ref, be2_ref,
    o_ref,
    *, n_heads, head_dim, eps,
):
    Bt, S, D = x_ref.shape
    H, hd = n_heads, head_dim
    M = Bt * S

    # flatten batch into the matmul row dimension (major-dim merge, layout free)
    x = x_ref[...].reshape(M, D)              # (M, D) float32
    x_bf = x.astype(jnp.bfloat16)

    # --- fused Q/K/V projection: one (M, D) @ (D, 3D) MXU matmul ---
    qkv = jnp.dot(x_bf, wqkv_ref[...],
                  preferred_element_type=jnp.float32) + bqkv_ref[...]

    def heads(t):
        # (M, D) f32 -> (H*Bt, S, hd) bf16, head-major batch ordering.
        th = jnp.transpose(t.reshape(M, H, hd), (1, 0, 2))   # (H, M, hd)
        return th.reshape(H * Bt, S, hd).astype(jnp.bfloat16)

    qh = heads(qkv[:, :D])            # slices at 128-lane boundaries
    kh = heads(qkv[:, D:2 * D])
    vh = heads(qkv[:, 2 * D:])

    inv_scale = 1.0 / (float(head_dim) ** 0.5)

    # batched scores over (H*Bt): (HB, S, S) in f32
    energy = jnp.einsum("bqd,bkd->bqk", qh, kh,
                        preferred_element_type=jnp.float32) * inv_scale

    # additive mask bias precomputed in the wrapper: 0 = keep, -1e10 = pad
    energy = energy.reshape(H, Bt, S, S) + bias_ref[...][None]   # (1,Bt,1,S)

    # numerically-stable softmax in f32, exact normalization
    m = jnp.max(energy, axis=-1, keepdims=True)
    p = jnp.exp(energy - m)
    attn = p / jnp.sum(p, axis=-1, keepdims=True)
    attn = attn.reshape(H * Bt, S, S).astype(jnp.bfloat16)

    # (HB, S, S) @ (HB, S, hd) -> (HB, S, hd)
    weighted = jnp.einsum("bqk,bkd->bqd", attn, vh,
                          preferred_element_type=jnp.float32)

    # --- output projection with host-reshaped Wo (H, hd, D): no merge transpose ---
    w_h = weighted.reshape(H, M, hd).astype(jnp.bfloat16)        # major merge, free
    partial = jnp.einsum("hmd,hdo->hmo", w_h, wo_ref[...],
                         preferred_element_type=jnp.float32)     # (H, M, D)
    attn_out = jnp.sum(partial, axis=0) + bo_ref[...]            # (M, D)

    # --- residual + LayerNorm 1 (f32) ---
    y = x + attn_out
    mu = jnp.mean(y, axis=-1, keepdims=True)
    var = jnp.mean((y - mu) ** 2, axis=-1, keepdims=True)
    y = (y - mu) * lax.rsqrt(var + eps) * g1_ref[...] + be1_ref[...]

    # --- position-wise feed forward (bf16 MXU inputs, f32 accumulate) ---
    h1 = jnp.maximum(
        jnp.dot(y.astype(jnp.bfloat16), w1_ref[...],
                preferred_element_type=jnp.float32) + b1_ref[...],
        0.0)
    ff = jnp.dot(h1.astype(jnp.bfloat16), w2_ref[...],
                 preferred_element_type=jnp.float32) + b2_ref[...]

    # --- residual + LayerNorm 2 (f32) ---
    z = y + ff
    mu2 = jnp.mean(z, axis=-1, keepdims=True)
    var2 = jnp.mean((z - mu2) ** 2, axis=-1, keepdims=True)
    z = (z - mu2) * lax.rsqrt(var2 + eps) * g2_ref[...] + be2_ref[...]

    o_ref[...] = z.reshape(Bt, S, D).astype(o_ref.dtype)


# ----------------------------------------------------------------------------
# Wrapper
# ----------------------------------------------------------------------------
def _num_tensorcores():
    """Best-effort TC-per-device count (v7x / megacore chips have 2)."""
    try:
        kind = jax.devices()[0].device_kind.lower()
    except Exception:
        return 1
    for tag in ("v7", "7x", "v4", "v5p"):
        if tag in kind:
            return 2
    return 1


def _choose_block_b(B, S, n_cores):
    """Fuse as many batch elements per step as reasonable (~256 rows), but
    keep at least `n_cores` grid steps so megacore chips shard the grid."""
    target_rows = 256
    bt = max(1, min(B, max(1, target_rows // max(S, 1))))
    while B % bt:
        bt -= 1
    while n_cores > 1 and (B // bt) < n_cores and bt > 1:
        bt -= 1
        while B % bt:
            bt -= 1
    return bt


def _const_spec(shape):
    n = len(shape)
    return pl.BlockSpec(shape, lambda b, n=n: (0,) * n)


def encoder_layer_pallas(src, src_mask, p, n_heads, *, block_b=None):
    """EncoderLayer.forward(src, src_mask) with dropout = identity (eval).

    src:      (B, S, D) float32
    src_mask: (B, 1, S) float (1 = keep, 0 = pad) or None
    p:        dict of layer params (weights stored as (in, out))
    """
    B, S, D = src.shape
    head_dim = D // n_heads
    pff = p["w1"].shape[1]
    bf = jnp.bfloat16

    if src_mask is None:
        mask = jnp.ones((B, 1, S), jnp.float32)
    else:
        mask = jnp.asarray(src_mask).reshape(B, 1, S).astype(jnp.float32)
    # additive mask bias: 0 where keep, -1e10 where pad
    mask_bias = (mask - 1.0) * 1e10

    if block_b is None:
        block_b = _choose_block_b(B, S, _num_tensorcores())
    grid = (B // block_b,)

    # host-side weight packing / reshaping (one-time cost)
    wqkv = jnp.concatenate([p["wq"], p["wk"], p["wv"]], axis=1).astype(bf)   # (D, 3D)
    bqkv = jnp.concatenate([p["bq"], p["bk"], p["bv"]], axis=1).astype(jnp.float32)
    wo_h = p["wo"].reshape(n_heads, head_dim, D).astype(bf)                  # (H, hd, D)

    kernel = functools.partial(
        _encoder_layer_kernel, n_heads=n_heads, head_dim=head_dim, eps=1e-5)

    in_specs = [
        pl.BlockSpec((block_b, S, D), lambda b: (b, 0, 0)),    # x block
        pl.BlockSpec((block_b, 1, S), lambda b: (b, 0, 0)),    # mask bias block
        _const_spec((D, 3 * D)), _const_spec((1, 3 * D)),      # Wqkv, bqkv
        _const_spec((n_heads, head_dim, D)), _const_spec((1, D)),  # Wo (per-head), bo
        _const_spec((1, D)), _const_spec((1, D)),              # ln1 gamma, beta
        _const_spec((D, pff)), _const_spec((1, pff)),          # W1, b1
        _const_spec((pff, D)), _const_spec((1, D)),            # W2, b2
        _const_spec((1, D)), _const_spec((1, D)),              # ln2 gamma, beta
    ]

    return pl.pallas_call(
        kernel,
        out_shape=jax.ShapeDtypeStruct((B, S, D), src.dtype),
        grid=grid,
        in_specs=in_specs,
        out_specs=pl.BlockSpec((block_b, S, D), lambda b: (b, 0, 0)),
        compiler_params=pltpu.CompilerParams(
            dimension_semantics=("parallel",),
            vmem_limit_bytes=32 * 1024 * 1024),
    )(src, mask_bias,
      wqkv, bqkv, wo_h, p["bo"].astype(jnp.float32),
      p["g1"], p["be1"],
      p["w1"].astype(bf), p["b1"], p["w2"].astype(bf), p["b2"],
      p["g2"], p["be2"])


# ----------------------------------------------------------------------------
# Pure-JAX f32 reference (PyTorch EncoderLayer semantics, dropout = identity)
# ----------------------------------------------------------------------------
def encoder_layer_ref(src, mask, p, n_heads, eps=1e-5):
    B, S, D = src.shape
    hd = D // n_heads

    def ln(t, g, b):
        mu = jnp.mean(t, -1, keepdims=True)
        var = jnp.mean((t - mu) ** 2, -1, keepdims=True)
        return (t - mu) * lax.rsqrt(var + eps) * g + b

    q = src @ p["wq"] + p["bq"]
    k = src @ p["wk"] + p["bk"]
    v = src @ p["wv"] + p["bv"]
    qh = q.reshape(B, S, n_heads, hd).transpose(0, 2, 1, 3)
    kh = k.reshape(B, S, n_heads, hd).transpose(0, 2, 1, 3)
    vh = v.reshape(B, S, n_heads, hd).transpose(0, 2, 1, 3)
    energy = jnp.einsum("bhqd,bhkd->bhqk", qh, kh) / (hd ** 0.5)
    energy = jnp.where(mask[:, :, None, :] == 0.0, -1e10, energy)
    attn = jax.nn.softmax(energy, axis=-1)
    weighted = jnp.einsum("bhqk,bhkd->bhqd", attn, vh)
    weighted = weighted.transpose(0, 2, 1, 3).reshape(B, S, D)
    attn_out = weighted @ p["wo"] + p["bo"]
    y = ln(src + attn_out, p["g1"], p["be1"])
    ff = jnp.maximum(y @ p["w1"] + p["b1"], 0.0) @ p["w2"] + p["b2"]
    return ln(y + ff, p["g2"], p["be2"])


# ----------------------------------------------------------------------------
# Deterministic parameter construction (matches module shapes; weights (in, out))
# ----------------------------------------------------------------------------
def init_layer_params(key, d_model, pff_dim):
    ks = jax.random.split(key, 12)
    s = 1.0 / (d_model ** 0.5)
    return {
        "wq": s * jax.random.normal(ks[0], (d_model, d_model), jnp.float32),
        "bq": 0.01 * jax.random.normal(ks[1], (1, d_model), jnp.float32),
        "wk": s * jax.random.normal(ks[2], (d_model, d_model), jnp.float32),
        "bk": 0.01 * jax.random.normal(ks[3], (1, d_model), jnp.float32),
        "wv": s * jax.random.normal(ks[4], (d_model, d_model), jnp.float32),
        "bv": 0.01 * jax.random.normal(ks[5], (1, d_model), jnp.float32),
        "wo": s * jax.random.normal(ks[6], (d_model, d_model), jnp.float32),
        "bo": 0.01 * jax.random.normal(ks[7], (1, d_model), jnp.float32),
        "g1": 1.0 + 0.1 * jax.random.normal(ks[8], (1, d_model), jnp.float32),
        "be1": 0.1 * jax.random.normal(ks[9], (1, d_model), jnp.float32),
        "w1": s * jax.random.normal(ks[10], (d_model, pff_dim), jnp.float32),
        "b1": jnp.zeros((1, pff_dim), jnp.float32),
        "w2": (1.0 / (pff_dim ** 0.5))
              * jax.random.normal(ks[11], (pff_dim, d_model), jnp.float32),
        "b2": jnp.zeros((1, d_model), jnp.float32),
        "g2": jnp.ones((1, d_model), jnp.float32),
        "be2": jnp.zeros((1, d_model), jnp.float32),
    }


if __name__ == "__main__":
    # Small, lane-aligned config: B=2, S=16, d_model=128, n_heads=4, pff=256.
    key = jax.random.PRNGKey(0)
    k_par, k_src = jax.random.split(key)

    B, S, d_model, n_heads, pff_dim = 2, 16, 128, 4, 256

    params = init_layer_params(k_par, d_model, pff_dim)
    src = jax.random.normal(k_src, (B, S, d_model), jnp.float32)

    # second batch element has 3 padded (masked-out) key positions
    lengths = jnp.array([S, S - 3])
    src_mask = (jnp.arange(S)[None, :] < lengths[:, None]) \
        .astype(jnp.float32).reshape(B, 1, S)

    # TODO(synk): nn.Dropout (training-mode stochastic masking) is identity here.
    out = encoder_layer_pallas(src, src_mask, params, n_heads)
    jax.block_until_ready(out)
    assert out.shape == (B, S, d_model)

    ref = encoder_layer_ref(src, src_mask, params, n_heads)
    max_err = float(jnp.max(jnp.abs(out - ref)))
    # bf16 MXU inputs vs f32 reference -> loose tolerance (softmax is exact now)
    assert jnp.allclose(out, ref, rtol=0.1, atol=0.1), f"max abs err {max_err}"
    print("KERNEL_OK")
</pallas_src>

<mosaic_0001>
module attributes {stable_mosaic.version = 11 : i64} {
  func.func @_encoder_layer_kernel(%arg0: i32, %arg1: memref<2x16x128xf32, #tpu.memory_space<vmem>>, %arg2: memref<2x1x16xf32, #tpu.memory_space<vmem>>, %arg3: memref<128x384xbf16, #tpu.memory_space<vmem>>, %arg4: memref<1x384xf32, #tpu.memory_space<vmem>>, %arg5: memref<4x32x128xbf16, #tpu.memory_space<vmem>>, %arg6: memref<1x128xf32, #tpu.memory_space<vmem>>, %arg7: memref<1x128xf32, #tpu.memory_space<vmem>>, %arg8: memref<1x128xf32, #tpu.memory_space<vmem>>, %arg9: memref<128x256xbf16, #tpu.memory_space<vmem>>, %arg10: memref<1x256xf32, #tpu.memory_space<vmem>>, %arg11: memref<256x128xbf16, #tpu.memory_space<vmem>>, %arg12: memref<1x128xf32, #tpu.memory_space<vmem>>, %arg13: memref<1x128xf32, #tpu.memory_space<vmem>>, %arg14: memref<1x128xf32, #tpu.memory_space<vmem>>, %arg15: memref<2x16x128xf32, #tpu.memory_space<vmem>>) attributes {dimension_semantics = [#tpu.dimension_semantics<parallel>], iteration_bounds = array<i64: 1>, scalar_prefetch = 0 : i64, scratch_operands = 0 : i64, tpu.core_type = #tpu.core_type<tc>, window_params = [{transform_indices = @transform_0, window_bounds = array<i64: 2, 16, 128>}, {transform_indices = @transform_1, window_bounds = array<i64: 2, 1, 16>}, {pipeline_mode = #tpu.pipeline_mode<synchronous>, transform_indices = @transform_2, window_bounds = array<i64: 128, 384>}, {pipeline_mode = #tpu.pipeline_mode<synchronous>, transform_indices = @transform_3, window_bounds = array<i64: 1, 384>}, {pipeline_mode = #tpu.pipeline_mode<synchronous>, transform_indices = @transform_4, window_bounds = array<i64: 4, 32, 128>}, {pipeline_mode = #tpu.pipeline_mode<synchronous>, transform_indices = @transform_5, window_bounds = array<i64: 1, 128>}, {pipeline_mode = #tpu.pipeline_mode<synchronous>, transform_indices = @transform_6, window_bounds = array<i64: 1, 128>}, {pipeline_mode = #tpu.pipeline_mode<synchronous>, transform_indices = @transform_7, window_bounds = array<i64: 1, 128>}, {pipeline_mode = #tpu.pipeline_mode<synchronous>, transform_indices = @transform_8, window_bounds = array<i64: 128, 256>}, {pipeline_mode = #tpu.pipeline_mode<synchronous>, transform_indices = @transform_9, window_bounds = array<i64: 1, 256>}, {pipeline_mode = #tpu.pipeline_mode<synchronous>, transform_indices = @transform_10, window_bounds = array<i64: 256, 128>}, {pipeline_mode = #tpu.pipeline_mode<synchronous>, transform_indices = @transform_11, window_bounds = array<i64: 1, 128>}, {pipeline_mode = #tpu.pipeline_mode<synchronous>, transform_indices = @transform_12, window_bounds = array<i64: 1, 128>}, {pipeline_mode = #tpu.pipeline_mode<synchronous>, transform_indices = @transform_13, window_bounds = array<i64: 1, 128>}, {transform_indices = @transform_14, window_bounds = array<i64: 2, 16, 128>}]} {
    %c0 = arith.constant 0 : index
    %c0_0 = arith.constant 0 : index
    %c0_1 = arith.constant 0 : index
    %0 = vector.load %arg1[%c0, %c0_0, %c0_1] : memref<2x16x128xf32, #tpu.memory_space<vmem>>, vector<2x16x128xf32>
    %1 = vector.shape_cast %0 : vector<2x16x128xf32> to vector<32x128xf32>
    %2 = arith.truncf %1 : vector<32x128xf32> to vector<32x128xbf16>
    %c0_2 = arith.constant 0 : index
    %c0_3 = arith.constant 0 : index
    %3 = vector.load %arg3[%c0_2, %c0_3] : memref<128x384xbf16, #tpu.memory_space<vmem>>, vector<128x384xbf16>
    %cst = arith.constant dense<0.000000e+00> : vector<32x384xf32>
    %4 = tpu.matmul %2, %3, %cst {dimension_numbers = #tpu.dot_dimension_numbers<[1], [0], [0], [1], [0, 0, 1, 1], [], []>} : vector<32x128xbf16>, vector<128x384xbf16>, vector<32x384xf32> -> vector<32x384xf32>
    %c0_4 = arith.constant 0 : index
    %c0_5 = arith.constant 0 : index
    %5 = vector.load %arg4[%c0_4, %c0_5] : memref<1x384xf32, #tpu.memory_space<vmem>>, vector<1x384xf32>
    %6 = vector.broadcast %5 : vector<1x384xf32> to vector<32x384xf32>
    %7 = arith.addf %4, %6 : vector<32x384xf32>
    %8 = vector.extract_strided_slice %7 {offsets = [0, 0], sizes = [32, 128], strides = [1, 1]} : vector<32x384xf32> to vector<32x128xf32>
    %9 = vector.shape_cast %8 : vector<32x128xf32> to vector<32x4x32xf32>
    %10 = tpu.transpose %9, [1, 0, 2] : vector<32x4x32xf32> -> vector<4x32x32xf32>
    %11 = vector.shape_cast %10 : vector<4x32x32xf32> to vector<8x16x32xf32>
    %12 = arith.truncf %11 : vector<8x16x32xf32> to vector<8x16x32xbf16>
    %13 = vector.extract_strided_slice %7 {offsets = [0, 128], sizes = [32, 128], strides = [1, 1]} : vector<32x384xf32> to vector<32x128xf32>
    %14 = vector.shape_cast %13 : vector<32x128xf32> to vector<32x4x32xf32>
    %15 = tpu.transpose %14, [1, 0, 2] : vector<32x4x32xf32> -> vector<4x32x32xf32>
    %16 = vector.shape_cast %15 : vector<4x32x32xf32> to vector<8x16x32xf32>
    %17 = arith.truncf %16 : vector<8x16x32xf32> to vector<8x16x32xbf16>
    %18 = vector.extract_strided_slice %7 {offsets = [0, 256], sizes = [32, 128], strides = [1, 1]} : vector<32x384xf32> to vector<32x128xf32>
    %19 = vector.shape_cast %18 : vector<32x128xf32> to vector<32x4x32xf32>
    %20 = tpu.transpose %19, [1, 0, 2] : vector<32x4x32xf32> -> vector<4x32x32xf32>
    %21 = vector.shape_cast %20 : vector<4x32x32xf32> to vector<8x16x32xf32>
    %22 = arith.truncf %21 : vector<8x16x32xf32> to vector<8x16x32xbf16>
    "tpu.trace_start"() <{level = 10 : i32, message = "bqd,bkd->bqk"}> : () -> ()
    %cst_6 = arith.constant dense<0.000000e+00> : vector<8x16x16xf32>
    %23 = tpu.matmul %12, %17, %cst_6 {dimension_numbers = #tpu.dot_dimension_numbers<[2], [2], [1], [1], [0, 0, 0, 1, 1, 1], [0], [0]>} : vector<8x16x32xbf16>, vector<8x16x32xbf16>, vector<8x16x16xf32> -> vector<8x16x16xf32>
    "tpu.trace_stop"() : () -> ()
    %cst_7 = arith.constant 0.176776692 : f32
    %24 = vector.broadcast %cst_7 : f32 to vector<8x16x16xf32>
    %25 = arith.mulf %23, %24 : vector<8x16x16xf32>
    %26 = vector.shape_cast %25 : vector<8x16x16xf32> to vector<4x2x16x16xf32>
    %c0_8 = arith.constant 0 : index
    %c0_9 = arith.constant 0 : index
    %c0_10 = arith.constant 0 : index
    %27 = vector.load %arg2[%c0_8, %c0_9, %c0_10] : memref<2x1x16xf32, #tpu.memory_space<vmem>>, vector<2x1x16xf32>
    %28 = vector.shape_cast %27 : vector<2x1x16xf32> to vector<1x2x1x16xf32>
    %29 = vector.broadcast %28 : vector<1x2x1x16xf32> to vector<4x2x16x16xf32>
    %30 = arith.addf %26, %29 : vector<4x2x16x16xf32>
    %cst_11 = arith.constant dense<0xFF800000> : vector<4x2x16xf32>
    %31 = vector.multi_reduction <maximumf>, %30, %cst_11 [3] : vector<4x2x16x16xf32> to vector<4x2x16xf32>
    %32 = vector.shape_cast %31 : vector<4x2x16xf32> to vector<4x2x16x1xf32>
    %33 = vector.broadcast %32 : vector<4x2x16x1xf32> to vector<4x2x16x16xf32>
    %34 = arith.subf %30, %33 : vector<4x2x16x16xf32>
    %35 = math.exp %34 : vector<4x2x16x16xf32>
    %cst_12 = arith.constant dense<0.000000e+00> : vector<4x2x16xf32>
    %36 = vector.multi_reduction <add>, %35, %cst_12 [3] : vector<4x2x16x16xf32> to vector<4x2x16xf32>
    %37 = vector.shape_cast %36 : vector<4x2x16xf32> to vector<4x2x16x1xf32>
    %38 = vector.broadcast %37 : vector<4x2x16x1xf32> to vector<4x2x16x16xf32>
    %39 = arith.divf %35, %38 : vector<4x2x16x16xf32>
    %40 = vector.shape_cast %39 : vector<4x2x16x16xf32> to vector<8x16x16xf32>
    %41 = arith.truncf %40 : vector<8x16x16xf32> to vector<8x16x16xbf16>
    "tpu.trace_start"() <{level = 10 : i32, message = "bqk,bkd->bqd"}> : () -> ()
    %cst_13 = arith.constant dense<0.000000e+00> : vector<8x16x32xf32>
    %42 = tpu.matmul %41, %22, %cst_13 {dimension_numbers = #tpu.dot_dimension_numbers<[2], [1], [1], [2], [0, 0, 0, 1, 1, 2], [0], [0]>} : vector<8x16x16xbf16>, vector<8x16x32xbf16>, vector<8x16x32xf32> -> vector<8x16x32xf32>
    "tpu.trace_stop"() : () -> ()
    %43 = vector.shape_cast %42 : vector<8x16x32xf32> to vector<4x32x32xf32>
    %44 = arith.truncf %43 : vector<4x32x32xf32> to vector<4x32x32xbf16>
    %c0_14 = arith.constant 0 : index
    %c0_15 = arith.constant 0 : index
    %c0_16 = arith.constant 0 : index
    %45 = vector.load %arg5[%c0_14, %c0_15, %c0_16] : memref<4x32x128xbf16, #tpu.memory_space<vmem>>, vector<4x32x128xbf16>
    "tpu.trace_start"() <{level = 10 : i32, message = "hmd,hdo->hmo"}> : () -> ()
    %cst_17 = arith.constant dense<0.000000e+00> : vector<4x32x128xf32>
    %46 = tpu.matmul %44, %45, %cst_17 {dimension_numbers = #tpu.dot_dimension_numbers<[2], [1], [1], [2], [0, 0, 0, 1, 1, 2], [0], [0]>} : vector<4x32x32xbf16>, vector<4x32x128xbf16>, vector<4x32x128xf32> -> vector<4x32x128xf32>
    "tpu.trace_stop"() : () -> ()
    %cst_18 = arith.constant dense<0.000000e+00> : vector<32x128xf32>
    %47 = vector.multi_reduction <add>, %46, %cst_18 [0] : vector<4x32x128xf32> to vector<32x128xf32>
    %c0_19 = arith.constant 0 : index
    %c0_20 = arith.constant 0 : index
    %48 = vector.load %arg6[%c0_19, %c0_20] : memref<1x128xf32, #tpu.memory_space<vmem>>, vector<1x128xf32>
    %49 = vector.broadcast %48 : vector<1x128xf32> to vector<32x128xf32>
    %50 = arith.addf %47, %49 : vector<32x128xf32>
    %51 = arith.addf %1, %50 : vector<32x128xf32>
    %cst_21 = arith.constant dense<0.000000e+00> : vector<32xf32>
    %52 = vector.multi_reduction <add>, %51, %cst_21 [1] : vector<32x128xf32> to vector<32xf32>
    %53 = vector.shape_cast %52 : vector<32xf32> to vector<32x1xf32>
    %cst_22 = arith.constant 1.280000e+02 : f32
    %54 = vector.broadcast %cst_22 : f32 to vector<32x1xf32>
    %55 = arith.divf %53, %54 : vector<32x1xf32>
    %56 = vector.broadcast %55 : vector<32x1xf32> to vector<32x128xf32>
    %57 = arith.subf %51, %56 : vector<32x128xf32>
    %58 = arith.mulf %57, %57 : vector<32x128xf32>
    %cst_23 = arith.constant dense<0.000000e+00> : vector<32xf32>
    %59 = vector.multi_reduction <add>, %58, %cst_23 [1] : vector<32x128xf32> to vector<32xf32>
    %60 = vector.shape_cast %59 : vector<32xf32> to vector<32x1xf32>
    %cst_24 = arith.constant 1.280000e+02 : f32
    %61 = vector.broadcast %cst_24 : f32 to vector<32x1xf32>
    %62 = arith.divf %60, %61 : vector<32x1xf32>
    %63 = vector.broadcast %55 : vector<32x1xf32> to vector<32x128xf32>
    %64 = arith.subf %51, %63 : vector<32x128xf32>
    %cst_25 = arith.constant 9.99999974E-6 : f32
    %65 = vector.broadcast %cst_25 : f32 to vector<32x1xf32>
    %66 = arith.addf %62, %65 : vector<32x1xf32>
    %67 = math.rsqrt %66 : vector<32x1xf32>
    %68 = vector.broadcast %67 : vector<32x1xf32> to vector<32x128xf32>
    %69 = arith.mulf %64, %68 : vector<32x128xf32>
    %c0_26 = arith.constant 0 : index
    %c0_27 = arith.constant 0 : index
    %70 = vector.load %arg7[%c0_26, %c0_27] : memref<1x128xf32, #tpu.memory_space<vmem>>, vector<1x128xf32>
    %71 = vector.broadcast %70 : vector<1x128xf32> to vector<32x128xf32>
    %72 = arith.mulf %69, %71 : vector<32x128xf32>
    %c0_28 = arith.constant 0 : index
    %c0_29 = arith.constant 0 : index
    %73 = vector.load %arg8[%c0_28, %c0_29] : memref<1x128xf32, #tpu.memory_space<vmem>>, vector<1x128xf32>
    %74 = vector.broadcast %73 : vector<1x128xf32> to vector<32x128xf32>
    %75 = arith.addf %72, %74 : vector<32x128xf32>
    %76 = arith.truncf %75 : vector<32x128xf32> to vector<32x128xbf16>
    %c0_30 = arith.constant 0 : index
    %c0_31 = arith.constant 0 : index
    %77 = vector.load %arg9[%c0_30, %c0_31] : memref<128x256xbf16, #tpu.memory_space<vmem>>, vector<128x256xbf16>
    %cst_32 = arith.constant dense<0.000000e+00> : vector<32x256xf32>
    %78 = tpu.matmul %76, %77, %cst_32 {dimension_numbers = #tpu.dot_dimension_numbers<[1], [0], [0], [1], [0, 0, 1, 1], [], []>} : vector<32x128xbf16>, vector<128x256xbf16>, vector<32x256xf32> -> vector<32x256xf32>
    %c0_33 = arith.constant 0 : index
    %c0_34 = arith.constant 0 : index
    %79 = vector.load %arg10[%c0_33, %c0_34] : memref<1x256xf32, #tpu.memory_space<vmem>>, vector<1x256xf32>
    %80 = vector.broadcast %79 : vector<1x256xf32> to vector<32x256xf32>
    %81 = arith.addf %78, %80 : vector<32x256xf32>
    %cst_35 = arith.constant 0.000000e+00 : f32
    %82 = vector.broadcast %cst_35 : f32 to vector<32x256xf32>
    %83 = arith.maximumf %81, %82 : vector<32x256xf32>
    %84 = arith.truncf %83 : vector<32x256xf32> to vector<32x256xbf16>
    %c0_36 = arith.constant 0 : index
    %c0_37 = arith.constant 0 : index
    %85 = vector.load %arg11[%c0_36, %c0_37] : memref<256x128xbf16, #tpu.memory_space<vmem>>, vector<256x128xbf16>
    %cst_38 = arith.constant dense<0.000000e+00> : vector<32x128xf32>
    %86 = tpu.matmul %84, %85, %cst_38 {dimension_numbers = #tpu.dot_dimension_numbers<[1], [0], [0], [1], [0, 0, 1, 1], [], []>} : vector<32x256xbf16>, vector<256x128xbf16>, vector<32x128xf32> -> vector<32x128xf32>
    %c0_39 = arith.constant 0 : index
    %c0_40 = arith.constant 0 : index
    %87 = vector.load %arg12[%c0_39, %c0_40] : memref<1x128xf32, #tpu.memory_space<vmem>>, vector<1x128xf32>
    %88 = vector.broadcast %87 : vector<1x128xf32> to vector<32x128xf32>
    %89 = arith.addf %86, %88 : vector<32x128xf32>
    %90 = arith.addf %75, %89 : vector<32x128xf32>
    %cst_41 = arith.constant dense<0.000000e+00> : vector<32xf32>
    %91 = vector.multi_reduction <add>, %90, %cst_41 [1] : vector<32x128xf32> to vector<32xf32>
    %92 = vector.shape_cast %91 : vector<32xf32> to vector<32x1xf32>
    %cst_42 = arith.constant 1.280000e+02 : f32
    %93 = vector.broadcast %cst_42 : f32 to vector<32x1xf32>
    %94 = arith.divf %92, %93 : vector<32x1xf32>
    %95 = vector.broadcast %94 : vector<32x1xf32> to vector<32x128xf32>
    %96 = arith.subf %90, %95 : vector<32x128xf32>
    %97 = arith.mulf %96, %96 : vector<32x128xf32>
    %cst_43 = arith.constant dense<0.000000e+00> : vector<32xf32>
    %98 = vector.multi_reduction <add>, %97, %cst_43 [1] : vector<32x128xf32> to vector<32xf32>
    %99 = vector.shape_cast %98 : vector<32xf32> to vector<32x1xf32>
    %cst_44 = arith.constant 1.280000e+02 : f32
    %100 = vector.broadcast %cst_44 : f32 to vector<32x1xf32>
    %101 = arith.divf %99, %100 : vector<32x1xf32>
    %102 = vector.broadcast %94 : vector<32x1xf32> to vector<32x128xf32>
    %103 = arith.subf %90, %102 : vector<32x128xf32>
    %cst_45 = arith.constant 9.99999974E-6 : f32
    %104 = vector.broadcast %cst_45 : f32 to vector<32x1xf32>
    %105 = arith.addf %101, %104 : vector<32x1xf32>
    %106 = math.rsqrt %105 : vector<32x1xf32>
    %107 = vector.broadcast %106 : vector<32x1xf32> to vector<32x128xf32>
    %108 = arith.mulf %103, %107 : vector<32x128xf32>
    %c0_46 = arith.constant 0 : index
    %c0_47 = arith.constant 0 : index
    %109 = vector.load %arg13[%c0_46, %c0_47] : memref<1x128xf32, #tpu.memory_space<vmem>>, vector<1x128xf32>
    %110 = vector.broadcast %109 : vector<1x128xf32> to vector<32x128xf32>
    %111 = arith.mulf %108, %110 : vector<32x128xf32>
    %c0_48 = arith.constant 0 : index
    %c0_49 = arith.constant 0 : index
    %112 = vector.load %arg14[%c0_48, %c0_49] : memref<1x128xf32, #tpu.memory_space<vmem>>, vector<1x128xf32>
    %113 = vector.broadcast %112 : vector<1x128xf32> to vector<32x128xf32>
    %114 = arith.addf %111, %113 : vector<32x128xf32>
    %115 = vector.shape_cast %114 : vector<32x128xf32> to vector<2x16x128xf32>
    %c0_50 = arith.constant 0 : index
    %c0_51 = arith.constant 0 : index
    %c0_52 = arith.constant 0 : index
    %116 = vector.load %arg15[%c0_50, %c0_51, %c0_52] : memref<2x16x128xf32, #tpu.memory_space<vmem>>, vector<2x16x128xf32>
    tpu.vector_store %arg15[%c0_50, %c0_51, %c0_52], %115 {strides = array<i32>} : memref<2x16x128xf32, #tpu.memory_space<vmem>>, vector<2x16x128xf32>,
    return
  }
  func.func @transform_0(%arg0: i32) -> (i32, i32, i32) {
    %c0_i32 = arith.constant 0 : i32
    %c0_i32_0 = arith.constant 0 : i32
    %c0_i32_1 = arith.constant 0 : i32
    return %arg0, %c0_i32, %c0_i32_0 : i32, i32, i32
  }
  func.func @transform_1(%arg0: i32) -> (i32, i32, i32) {
    %c0_i32 = arith.constant 0 : i32
    %c0_i32_0 = arith.constant 0 : i32
    %c0_i32_1 = arith.constant 0 : i32
    return %arg0, %c0_i32, %c0_i32_0 : i32, i32, i32
  }
  func.func @transform_2(%arg0: i32) -> (i32, i32) {
    %c0_i32 = arith.constant 0 : i32
    %c0_i32_0 = arith.constant 0 : i32
    %c0_i32_1 = arith.constant 0 : i32
    return %c0_i32, %c0_i32_0 : i32, i32
  }
  func.func @transform_3(%arg0: i32) -> (i32, i32) {
    %c0_i32 = arith.constant 0 : i32
    %c0_i32_0 = arith.constant 0 : i32
    %c0_i32_1 = arith.constant 0 : i32
    return %c0_i32, %c0_i32_0 : i32, i32
  }
  func.func @transform_4(%arg0: i32) -> (i32, i32, i32) {
    %c0_i32 = arith.constant 0 : i32
    %c0_i32_0 = arith.constant 0 : i32
    %c0_i32_1 = arith.constant 0 : i32
    %c0_i32_2 = arith.constant 0 : i32
    return %c0_i32, %c0_i32_0, %c0_i32_1 : i32, i32, i32
  }
  func.func @transform_5(%arg0: i32) -> (i32, i32) {
    %c0_i32 = arith.constant 0 : i32
    %c0_i32_0 = arith.constant 0 : i32
    %c0_i32_1 = arith.constant 0 : i32
    return %c0_i32, %c0_i32_0 : i32, i32
  }
  func.func @transform_6(%arg0: i32) -> (i32, i32) {
    %c0_i32 = arith.constant 0 : i32
    %c0_i32_0 = arith.constant 0 : i32
    %c0_i32_1 = arith.constant 0 : i32
    return %c0_i32, %c0_i32_0 : i32, i32
  }
  func.func @transform_7(%arg0: i32) -> (i32, i32) {
    %c0_i32 = arith.constant 0 : i32
    %c0_i32_0 = arith.constant 0 : i32
    %c0_i32_1 = arith.constant 0 : i32
    return %c0_i32, %c0_i32_0 : i32, i32
  }
  func.func @transform_8(%arg0: i32) -> (i32, i32) {
    %c0_i32 = arith.constant 0 : i32
    %c0_i32_0 = arith.constant 0 : i32
    %c0_i32_1 = arith.constant 0 : i32
    return %c0_i32, %c0_i32_0 : i32, i32
  }
  func.func @transform_9(%arg0: i32) -> (i32, i32) {
    %c0_i32 = arith.constant 0 : i32
    %c0_i32_0 = arith.constant 0 : i32
    %c0_i32_1 = arith.constant 0 : i32
    return %c0_i32, %c0_i32_0 : i32, i32
  }
  func.func @transform_10(%arg0: i32) -> (i32, i32) {
    %c0_i32 = arith.constant 0 : i32
    %c0_i32_0 = arith.constant 0 : i32
    %c0_i32_1 = arith.constant 0 : i32
    return %c0_i32, %c0_i32_0 : i32, i32
  }
  func.func @transform_11(%arg0: i32) -> (i32, i32) {
    %c0_i32 = arith.constant 0 : i32
    %c0_i32_0 = arith.constant 0 : i32
    %c0_i32_1 = arith.constant 0 : i32
    return %c0_i32, %c0_i32_0 : i32, i32
  }
  func.func @transform_12(%arg0: i32) -> (i32, i32) {
    %c0_i32 = arith.constant 0 : i32
    %c0_i32_0 = arith.constant 0 : i32
    %c0_i32_1 = arith.constant 0 : i32
    return %c0_i32, %c0_i32_0 : i32, i32
  }
  func.func @transform_13(%arg0: i32) -> (i32, i32) {
    %c0_i32 = arith.constant 0 : i32
    %c0_i32_0 = arith.constant 0 : i32
    %c0_i32_1 = arith.constant 0 : i32
    return %c0_i32, %c0_i32_0 : i32, i32
  }
  func.func @transform_14(%arg0: i32) -> (i32, i32, i32) {
    %c0_i32 = arith.constant 0 : i32
    %c0_i32_0 = arith.constant 0 : i32
    %c0_i32_1 = arith.constant 0 : i32
    return %arg0, %c0_i32, %c0_i32_0 : i32, i32, i32
  }
}

</mosaic_0001>

<bundles_post_ra>
// kernel: tpu_custom_call.1
= control target key start
LH: loop header
LB: loop body
LE: loop exit
PB: predicated region body
PF: predicated region fallthrough
CT: control target
= control target key end

     0   :  { %19 = vsyncpa [#allocation3], 0  ;;  %s5699_s0 = inlined_call_operand.hbm [shape: f32[2,16,128], index: 0, kind: input, shape index: {}]   ;;  %s5700_s1 = inlined_call_operand.hbm [shape: f32[2,1,16], index: 1, kind: input, shape index: {}]   ;;  %s5701_s2 = inlined_call_operand.hbm [shape: bf16[128,384], index: 2, kind: input, shape index: {}]   ;;  %s5702_s3 = inlined_call_operand.vmem [shape: f32[1,384], index: 3, kind: input, shape index: {}]   ;;  %s5703_s4 = inlined_call_operand.hbm [shape: bf16[4,32,128], index: 4, kind: input, shape index: {}]   ;;  %s5704_s5 = inlined_call_operand.vmem [shape: f32[1,128], index: 5, kind: input, shape index: {}]   ;;  %s5705_s6 = inlined_call_operand.vmem [shape: f32[1,128], index: 6, kind: input, shape index: {}]   ;;  %s5706_s7 = inlined_call_operand.vmem [shape: f32[1,128], index: 7, kind: input, shape index: {}]   ;;  %s5707_s8 = inlined_call_operand.hbm [shape: bf16[128,256], index: 8, kind: input, shape index: {}]   ;;  %s5708_s9 = inlined_call_operand.vmem [shape: f32[1,256], index: 9, kind: input, shape index: {}]   ;;  %s5709_s10 = inlined_call_operand.hbm [shape: bf16[256,128], index: 10, kind: input, shape index: {}]   ;;  %s5710_s11 = inlined_call_operand.vmem [shape: f32[1,128], index: 11, kind: input, shape index: {}]   ;;  %s5711_s12 = inlined_call_operand.vmem [shape: f32[1,128], index: 12, kind: input, shape index: {}]   ;;  %s5712_s13 = inlined_call_operand.vmem [shape: f32[1,128], index: 13, kind: input, shape index: {}]   ;;  %s5713_s14 = inlined_call_operand.hbm [shape: f32[2,16,128], index: 14, kind: output, shape index: {}]  }
   0x1   :  { %20 = vsyncpa [#allocation6], 0 }
   0x2   :  { %21 = vsyncpa [#allocation9], 0 }
   0x3   :  { %22 = vsyncpa [#allocation12], 0 }
   0x4   :  { %23 = vsyncpa [#allocation4], 0  ;;  %s4681_s29 = smov [#allocation5]  }
   0x5   :  { %s41_s30 = sshll.u32 %s4681_s29, 4  ;;  %s42_s30 = int_to_ptr.vmem [resolvable:$true] %s41_s30 }
   0x6   :  { %s4539_s15 = scalar_lea.vmem %s42_s30, 32  ;;  %p4544_p1 = scmp.lt.s32.totalorder %s42_s30, %s42_s30 }
   0x7   :  { %p4540_p0 = scmp.ne.s32.totalorder %s42_s30, %s4539_s15  ;;  %p4545_p2 = scmp.lt.s32.totalorder %s4539_s15, %s4539_s15 }
   0x9   :  { %p4546_p3 = por %p4545_p2, %p4544_p1 }
   0xb   :  { %p4547_p4 = pnand %p4546_p3, %p4540_p0 }
   0xd   :  { %4550 = shalt.err (!%p4547_p4)
}
   0xe   :  { %s4682_s16 = smov 16   ;;  %s4683_s17 = smov 1  }
   0xf   :  { %47 = dma.hbm_to_vmem [thread:$0]  %s5700_s1, 32, %s42_s30, [#allocation6], %s4682_s16, %s4682_s16, %s4683_s17  }
  0x10   :  { %s4684_s20 = smov [#allocation8]  }
  0x11   :  { %s67_s21 = sshll.u32 %s4684_s20, 4  ;;  %s68_s21 = int_to_ptr.vmem [resolvable:$true] %s67_s21 }
  0x12   :  { %s4559_s22 = scalar_lea.vmem %s68_s21, 1024  ;;  %p4564_p6 = scmp.lt.s32.totalorder %s68_s21, %s68_s21 }
  0x13   :  { %p4560_p5 = scmp.ne.s32.totalorder %s68_s21, %s4559_s22  ;;  %p4565_p7 = scmp.lt.s32.totalorder %s4559_s22, %s4559_s22 }
  0x15   :  { %p4566_p8 = por %p4565_p7, %p4564_p6 }
  0x17   :  { %p4567_p9 = pnand %p4566_p8, %p4560_p5 }
  0x19   :  { %4570 = shalt.err (!%p4567_p9)
}
  0x1a   :  { %s4685_s23 = smov 64   ;;  %s4686_s24 = smov 4  }
  0x1b   :  { %73 = dma.hbm_to_vmem [thread:$0]  %s5703_s4, 1024, %s68_s21, [#allocation9], %s4685_s23, %s4685_s23, %s4686_s24  }
  0x1c   :  { %s4687_s1 = smov [#allocation2]  }
  0x1d   :  { %s29_s27 = sshll.u32 %s4687_s1, 4  ;;  %s30_s27 = int_to_ptr.vmem [resolvable:$true] %s29_s27 }
  0x1e   :  { %s4579_s28 = scalar_lea.vmem %s30_s27, 512  ;;  %p4584_p11 = scmp.lt.s32.totalorder %s30_s27, %s30_s27 }
  0x1f   :  { %p4580_p10 = scmp.ne.s32.totalorder %s30_s27, %s4579_s28  ;;  %p4585_p12 = scmp.lt.s32.totalorder %s4579_s28, %s4579_s28 }
  0x21   :  { %p4586_p13 = por %p4585_p12, %p4584_p11 }
  0x23   :  { %p4587_p0 = pnand %p4586_p13, %p4580_p10 }
  0x25   :  { %4590 = shalt.err (!%p4587_p0)
}
  0x26   :  { %s4688_s29 = smov 128   ;;  %s4689_s30 = smov 8  }
  0x27   :  { %35 = dma.hbm_to_vmem [thread:$0]  %s5699_s0, 512, %s30_s27, [#allocation3], %s4688_s29, %s4688_s29, %s4689_s30  }
  0x28   :  { %s4690_s4 = smov [#allocation7]  }
  0x29   :  { %s53_s17 = sshll.u32 %s4690_s4, 4  ;;  %s54_s17 = int_to_ptr.vmem [resolvable:$true] %s53_s17 }
  0x2a   :  { %s4599_s18 = scalar_lea.vmem %s54_s17, 3072  ;;  %p4604_p2 = scmp.lt.s32.totalorder %s54_s17, %s54_s17 }
  0x2b   :  { %p4600_p1 = scmp.ne.s32.totalorder %s54_s17, %s4599_s18  ;;  %p4605_p3 = scmp.lt.s32.totalorder %s4599_s18, %s4599_s18 }
  0x2d   :  { %p4606_p4 = por %p4605_p3, %p4604_p2 }
  0x2f   :  { %p4607_p5 = pnand %p4606_p4, %p4600_p1 }
  0x31   :  { %4610 = shalt.err (!%p4607_p5)
}
  0x32   :  { %s4691_s19 = smov 192   ;;  %s4692_s20 = smov 12  }
  0x33   :  { %59 = dma.hbm_to_vmem [thread:$0]  %s5701_s2, 3072, %s54_s17, [#allocation6], %s4691_s19, %s4691_s19, %s4692_s20  }
  0x34   :  { %s4693_s25 = smov [#allocation10]   ;;  %s4694_s1 = smov [#allocation11]  }
  0x35   :  { %s85_s26 = sshll.u32 %s4693_s25, 4  ;;  %s99_s0 = sshll.u32 %s4694_s1, 4  ;;  %s86_s26 = int_to_ptr.vmem [resolvable:$true] %s85_s26  ;;  %s100_s0 = int_to_ptr.vmem [resolvable:$true] %s99_s0 }
  0x36   :  { %s4619_s27 = scalar_lea.vmem %s86_s26, 2048  ;;  %p4624_p7 = scmp.lt.s32.totalorder %s86_s26, %s86_s26 }
  0x37   :  { %p4620_p6 = scmp.ne.s32.totalorder %s86_s26, %s4619_s27  ;;  %p4625_p8 = scmp.lt.s32.totalorder %s4619_s27, %s4619_s27 }
  0x39   :  { %p4626_p9 = por %p4625_p8, %p4624_p7 }
  0x3b   :  { %p4627_p10 = pnand %p4626_p9, %p4620_p6 }
  0x3d   :  { %4630 = shalt.err (!%p4627_p10)
}
  0x3e   :  { %91 = dma.hbm_to_vmem [thread:$0]  %s5707_s8, 2048, %s86_s26, [#allocation9], %s4688_s29, %s4688_s29, %s4689_s30  }
  0x3f   :  { %s4639_s2 = scalar_lea.vmem %s100_s0, 2048  ;;  %p4644_p12 = scmp.lt.s32.totalorder %s100_s0, %s100_s0 }
  0x40   :  { %p4640_p11 = scmp.ne.s32.totalorder %s100_s0, %s4639_s2  ;;  %p4645_p13 = scmp.lt.s32.totalorder %s4639_s2, %s4639_s2 }
  0x42   :  { %p4646_p0 = por %p4645_p13, %p4644_p12 }
  0x44   :  { %p4647_p1 = pnand %p4646_p0, %p4640_p11 }
  0x46   :  { %4650 = shalt.err (!%p4647_p1)
}
  0x47   :  { %105 = dma.hbm_to_vmem [thread:$0]  %s5709_s10, 2048, %s100_s0, [#allocation12], %s4685_s23, %s4685_s23, %s4686_s24  }
  0x48   :  { %4671 = dma.done.wait [#allocation3], 512  }
  0x49   :  { %4672 = vsyncadd [#allocation3], 4294966784 }
  0x4a   :  { %4673 = dma.done.wait [#allocation6], 3104  }
  0x4b   :  { %4674 = vsyncadd [#allocation6], 4294964192 }
  0x4c   :  { %4675 = dma.done.wait [#allocation9], 3072  }
  0x4d   :  { %4676 = vsyncadd [#allocation9], 4294964224 }
  0x4e   :  { %4677 = dma.done.wait [#allocation12], 2048  }
  0x4f   :  { %4678 = vsyncadd [#allocation12], 4294965248  ;;  %v5716_v0 = vmov 0   ;;  %v4367_v1 = vld [vmem:[#allocation7 + $0xac] ss:$12 sps:$4 sm:$0xff]   ;;  %v131_v8 = vld [vmem:[#allocation2] sm:$0xff]  ;;  %v171_v31 = vlaneseq }
  0x50   :  { %346 = vmatprep.mubr.bf16.mxu0 %v5716_v0  ;;  %v4369_v2 = vld [vmem:[#allocation7 + $0xa8] ss:$12 sps:$4 sm:$0xff]   ;;  %314 = vmatprep.subr.bf16.mxu0 %v4367_v1  ;;  %v4372_v4 = vld [vmem:[#allocation7 + $0x90] ss:$12 sps:$4 sm:$0xff]   ;;  %v4375_v6 = vld [vmem:[#allocation7 + $0x78] ss:$12 sps:$4 sm:$0xff]  }
  0x51   :  { %v4370_v3 = vld [vmem:[#allocation7 + $0x94] ss:$12 sps:$4 sm:$0xff]   ;;  %315 = vmatpush1.bf16.msra.mxu0 %v4369_v2  ;;  %v4373_v5 = vld [vmem:[#allocation7 + $0x7c] ss:$12 sps:$4 sm:$0xff]   ;;  %v4376_v7 = vld [vmem:[#allocation7 + $0x64] ss:$12 sps:$4 sm:$0xff]  }
  0x52   :  { %316 = vmatprep.subr.bf16.mxu0 %v4370_v3  ;;  %v4378_v9 = vld [vmem:[#allocation7 + $0x60] ss:$12 sps:$4 sm:$0xff]   ;;  %v4391_v13 = vld [vmem:[#allocation7 + $0xb0] ss:$12 sps:$4 sm:$0xff]   ;;  %v4392_v14 = vld [vmem:[#allocation7 + $0x98] ss:$12 sps:$4 sm:$0xff]  }
  0x53   :  { %v4379_v10 = vld [vmem:[#allocation7 + $0x4c] ss:$12 sps:$4 sm:$0xff]   ;;  %v4381_v15 = vld [vmem:[#allocation7 + $0x48] ss:$12 sps:$4 sm:$0xff]   ;;  %4197 = vmatprep.subr.bf16.mxu1 %v4391_v13  ;;  %v4384_v18 = vld [vmem:[#allocation7 + $0x30] ss:$12 sps:$4 sm:$0xff]  }
  0x54   :  { %v132_v11 = vld [vmem:[#allocation2 + $0x8] sm:$0xff]  ;;  %v4382_v16 = vld [vmem:[#allocation7 + $0x34] ss:$12 sps:$4 sm:$0xff]   ;;  %4198 = vmatpush3.bf16.msra.mxu1 %v4391_v13  ;;  %v4395_v27 = vld [vmem:[#allocation7 + $0x50] ss:$12 sps:$4 sm:$0xff]   ;;  %v4810_v32 = vshrl.u32 %v171_v31, 7 }
  0x55   :  { %317 = vmatpush1.bf16.msra.mxu0 %v4372_v4  ;;  %v135_v12 = vpack.c.bf16 %v132_v11, %v131_v8  ;;  %4199 = vmatprep.subr.bf16.mxu1 %v4392_v14  ;;  %v4393_v17 = vld [vmem:[#allocation7 + $0x80] ss:$12 sps:$4 sm:$0xff]   ;;  %v4385_v19 = vld [vmem:[#allocation7 + $0x1c] ss:$12 sps:$4 sm:$0xff]   ;;  %v4387_v21 = vld [vmem:[#allocation7 + $0x18] ss:$12 sps:$4 sm:$0xff]  }
  0x56   :  { %318 = vmatprep.subr.bf16.mxu0 %v4373_v5  ;;  %v4394_v20 = vld [vmem:[#allocation7 + $0x68] ss:$12 sps:$4 sm:$0xff]   ;;  %v4388_v22 = vld [vmem:[#allocation7 + $0x4] ss:$12 sps:$4 sm:$0xff]   ;;  %v4390_v23 = vld [vmem:[#allocation7] ss:$12 sps:$4 sm:$0xff]  }
  0x57   :  { %4213 = vmatprep.mubr.bf16.mxu1 %v135_v12  ;;  %v133_v24 = vld [vmem:[#allocation2 + $0x10] sm:$0xff]  ;;  %v134_v25 = vld [vmem:[#allocation2 + $0x18] sm:$0xff]  ;;  %v5714_v33 = vsub.s32 0, %v4810_v32  ;;  %v169_v34 = vld [vmem:[%s5702_s3] sm:$0x7]  ;;  %v5715_v35 = vsub.s32 1, %v4810_v32 }
  0x58   :  { %4200 = vmatpush3.bf16.msra.mxu1 %v4392_v14  ;;  %v136_v26 = vpack.c.bf16 %v134_v25, %v133_v24  ;;  %v4396_v28 = vld [vmem:[#allocation7 + $0x38] ss:$12 sps:$4 sm:$0xff]   ;;  %v4397_v29 = vld [vmem:[#allocation7 + $0x20] ss:$12 sps:$4 sm:$0xff]   ;;  %v4398_v30 = vld [vmem:[#allocation7 + $0x8] ss:$12 sps:$4 sm:$0xff]  }
  0x59   :  { %319 = vmatpush1.bf16.msra.mxu0 %v4375_v6  ;;  %4201 = vmatprep.subr.bf16.mxu1 %v4393_v17  ;;  %v174_v36 = vrot.slane %v169_v34, %v5714_v33  ;;  %v178_v37 = vrot.slane %v169_v34, %v5715_v35  ;;  %s4696_s24 = smov 96   ;;  %s4697_s3 = smov 32   ;;  %v4698_v54 = vmov 0.0   ;;  %vm4699_vm0 = vmmov 0  }
  0x5a   :  { %320 = vmatprep.subr.bf16.mxu0 %v4376_v7  ;;  %v181_v55 = vsub.s32 2, %v4810_v32  ;;  %v4700_v2 = vmov 1983009808   ;;  %v4701_v4 = vmov 1934713408   ;;  %vm2192_vm1 = vcmask 261120  }
  0x5b   :  { %v459_v3 = vunpack.c.l.s4 %v4700_v2  ;;  %v491_v5 = vunpack.c.l.s4 %v4701_v4  ;;  %vm2615_vm2 = vcmask 130048  }
  0x5c   :  { %4202 = vmatpush3.bf16.msra.mxu1 %v4393_v17  ;;  %v182_v57 = vrot.slane %v169_v34, %v181_v55 }
  0x5d   :  { %321 = vmatpush1.bf16.msra.mxu0 %v4378_v9  ;;  %4203 = vmatprep.subr.bf16.mxu1 %v4394_v20  ;;  %v460_v9 = vunpack.c.0.s8 %v459_v3 }
  0x5e   :  { %322 = vmatprep.subr.bf16.mxu0 %v4379_v10  ;;  %v492_v10 = vunpack.c.0.s8 %v491_v5 }
  0x60   :  { %4204 = vmatpush3.bf16.msra.mxu1 %v4394_v20 }
  0x61   :  { %323 = vmatpush1.bf16.msra.mxu0 %v4381_v15  ;;  %4205 = vmatprep.subr.bf16.mxu1 %v4395_v27  ;;  %v4921_v15 = vsub.s32 %v460_v9, %v4810_v32 }
  0x62   :  { %324 = vmatprep.subr.bf16.mxu0 %v4382_v16 }
  0x64   :  { %4206 = vmatpush3.bf16.msra.mxu1 %v4395_v27 }
  0x65   :  { %325 = vmatpush1.bf16.msra.mxu0 %v4384_v18  ;;  %4207 = vmatprep.subr.bf16.mxu1 %v4396_v28  ;;  %v4924_v18 = vsub.s32 %v492_v10, %v4810_v32 }
  0x66   :  { %326 = vmatprep.subr.bf16.mxu0 %v4385_v19 }
  0x68   :  { %4208 = vmatpush3.bf16.msra.mxu1 %v4396_v28 }
  0x69   :  { %327 = vmatpush1.bf16.msra.mxu0 %v4387_v21  ;;  %4209 = vmatprep.subr.bf16.mxu1 %v4397_v29 }
  0x6a   :  { %328 = vmatprep.subr.bf16.mxu0 %v4388_v22 }
  0x6c   :  { %4210 = vmatpush3.bf16.msra.mxu1 %v4397_v29 }
  0x6d   :  { %329 = vmatpush1.bf16.msra.mxu0 %v4390_v23  ;;  %4211 = vmatprep.subr.bf16.mxu1 %v4398_v30 }
  0x6e   :  { %4223 = vmatprep.subr.bf16.mxu0 %v4698_v54 }
  0x70   :  { %347 = vmatmul.mubr.bf16.vlgmr.msra.gmra.mxu0 %v135_v12  ;;  %4212 = vmatpush3.bf16.msra.mxu1 %v4398_v30 }
  0x71   :  { %356 = vmatprep.mubr.bf16.mxu0 %v5716_v0  ;;  %4217 = vmatprep.subr.bf16.mxu1 %v4698_v54 }
  0x73   :  { %4214 = vmatmul.mubr.bf16.vlgmr.msra.gmra.mxu1 %v136_v26 }
  0x74   :  { %4219 = vmatprep.mubr.msk.bf16.mxu1 %vm4699_vm0, %v4698_v54 }
  0x78   :  { %357 = vmatmul.mubr.bf16.gmra.mxu0 %v136_v26 }
  0x79   :  { %4225 = vmatprep.mubr.msk.bf16.mxu0 %vm4699_vm0, %v4698_v54 }
 0x130   :  { %v348_v38 = vpop.f32.mrf.mxu0 }
 0x131   :  { %v4821_v39 = vadd.f32 %v348_v38, %v174_v36 }
 0x132   :  { %v350_v40 = vpop.f32.mrf.mxu0 }
 0x133   :  { %v4823_v41 = vadd.f32 %v350_v40, %v178_v37  ;;  %420 = vrot.lane.b32.xlu0 %v4821_v39, %s4696_s24  ;;  %v4215_v56 = vpop.f32.mrf.mxu1 }
 0x134   :  { %v352_v42 = vpop.f32.mrf.mxu0  ;;  %v4902_v63 = vadd.f32 %v4215_v56, %v182_v57 }
 0x135   :  { %1024 = vrot.lane.b32.xlu1 %v4823_v41, %s4685_s23  ;;  %v4829_v43 = vadd.f32 %v352_v42, %v174_v36  ;;  %v401_v58 = vpop.f32.mrf.mxu1 }
 0x136   :  { %v354_v44 = vpop.f32.mrf.mxu0  ;;  %v4892_v59 = vadd.f32 %v401_v58, %v182_v57 }
 0x137   :  { %432 = vrot.lane.b32.xlu0 %v4821_v39, %s4685_s23  ;;  %v4843_v46 = vadd.f32 %v354_v44, %v178_v37  ;;  %v4216_v60 = vpop.f32.mrf.mxu1 }
 0x138   :  { %v358_v45 = vpop.f32.mrf.mxu0  ;;  %v4912_v7 = vadd.f32 %v4216_v60, %v182_v57 }
 0x139   :  { %422 = vrot.lane.b32.xlu1 %v4829_v43, %s4696_s24  ;;  %v4851_v49 = vadd.f32 %v358_v45, %v174_v36  ;;  %v404_v61 = vpop.f32.mrf.mxu1 }
 0x13a   :  { %v360_v47 = vpop.f32.mrf.mxu0  ;;  %v4896_v62 = vadd.f32 %v404_v61, %v182_v57 }
 0x13b   :  { %444 = vrot.lane.b32.xlu0 %v4821_v39, %s4697_s3  ;;  %v4859_v52 = vadd.f32 %v360_v47, %v178_v37 }
 0x13c   :  { %v362_v48 = vpop.f32.mrf.mxu0 }
 0x13d   :  { %434 = vrot.lane.b32.xlu1 %v4829_v43, %s4685_s23  ;;  %v4855_v50 = vadd.f32 %v362_v48, %v174_v36 }
 0x13e   :  { %v364_v51 = vpop.f32.mrf.mxu0 }
 0x13f   :  { %1012 = vrot.lane.b32.xlu0 %v4823_v41, %s4696_s24  ;;  %v4863_v53 = vadd.f32 %v364_v51, %v178_v37 }
 0x141   :  { %446 = vrot.lane.b32.xlu1 %v4829_v43, %s4697_s3 }
 0x143   :  { %1036 = vrot.lane.b32.xlu0 %v4823_v41, %s4697_s3 }
 0x145   :  { %1026 = vrot.lane.b32.xlu1 %v4843_v46, %s4685_s23 }
 0x147   :  { %1014 = vrot.lane.b32.xlu0 %v4843_v46, %s4696_s24 }
 0x149   :  { %1038 = vrot.lane.b32.xlu1 %v4843_v46, %s4697_s3 }
 0x14b   :  { %424 = vrot.lane.b32.xlu0 %v4851_v49, %s4696_s24 }
 0x14d   :  { %426 = vrot.lane.b32.xlu1 %v4855_v50, %s4696_s24 }
 0x14f   :  { %1016 = vrot.lane.b32.xlu0 %v4859_v52, %s4696_s24 }
 0x151   :  { %1018 = vrot.lane.b32.xlu1 %v4863_v53, %s4696_s24 }
 0x153   :  { %1028 = vrot.lane.b32.xlu0 %v4859_v52, %s4685_s23 }
 0x155   :  { %1030 = vrot.lane.b32.xlu1 %v4863_v53, %s4685_s23 }
 0x157   :  { %1040 = vrot.lane.b32.xlu0 %v4859_v52, %s4697_s3 }
 0x159   :  { %1042 = vrot.lane.b32.xlu1 %v4863_v53, %s4697_s3 }
 0x15b   :  { %436 = vrot.lane.b32.xlu0 %v4851_v49, %s4685_s23 }
 0x15d   :  { %438 = vrot.lane.b32.xlu1 %v4855_v50, %s4685_s23 }
 0x15f   :  { %448 = vrot.lane.b32.xlu0 %v4851_v49, %s4697_s3 }
 0x161   :  { %450 = vrot.lane.b32.xlu1 %v4855_v50, %s4697_s3 }
 0x163   :  { %1606 = vrot.lane.b32.xlu0 %v4896_v62, %s4696_s24 }
 0x165   :  { %1604 = vrot.lane.b32.xlu1 %v4892_v59, %s4696_s24 }
 0x167   :  { %1628 = vrot.lane.b32.xlu0 %v4892_v59, %s4697_s3 }
 0x169   :  { %1616 = vrot.lane.b32.xlu1 %v4892_v59, %s4685_s23 }
 0x16b   :  { %1608 = vrot.lane.b32.xlu0 %v4902_v63, %s4696_s24 }
 0x16d   :  { %1618 = vrot.lane.b32.xlu1 %v4896_v62, %s4685_s23 }
 0x171   :  { %1630 = vrot.lane.b32.xlu1 %v4896_v62, %s4697_s3 }
 0x175   :  { %1610 = vrot.lane.b32.xlu1 %v4912_v7, %s4696_s24 }
 0x1a5   :  { %v421_v1 = vpop.permute.xlu0 %420 }
 0x1a7   :  { %v4910_v6 = vpop.permute.xlu1 %1024 }
 0x1a8   :  { %v1048_v58 = vcombine.low %v4823_v41, %v4910_v6  ;;  %v1049_v60 = vcombine.high %v4823_v41, %v4910_v6 }
 0x1a9   :  { %v433_v8 = vpop.permute.xlu0 %432 }
 0x1aa   :  { %v456_v12 = vcombine.low %v4821_v39, %v433_v8  ;;  %v457_v13 = vcombine.high %v4821_v39, %v433_v8 }
 0x1ab   :  { %v423_v11 = vpop.permute.xlu1 %422 }
 0x1ac   :  { %v464_v20 = vrot.slane %v456_v12, %v4921_v15  ;;  %v471_v21 = vrot.slane %v457_v13, %v4921_v15 }
 0x1ad   :  { %v445_v14 = vpop.permute.xlu0 %444 }
 0x1ae   :  { %v472_v16 = vcombine.low %v421_v1, %v445_v14  ;;  %v473_v17 = vcombine.high %v421_v1, %v445_v14 }
 0x1af   :  { %v435_v19 = vpop.permute.xlu1 %434 }
 0x1b0   :  { %v480_v22 = vrot.slane %v472_v16, %v4921_v15  ;;  %v487_v23 = vrot.slane %v473_v17, %v4921_v15  ;;  %v524_v29 = vcombine.low %v4829_v43, %v435_v19  ;;  %v525_v30 = vcombine.high %v4829_v43, %v435_v19 }
 0x1b1   :  { %v1013_v24 = vpop.permute.xlu0 %1012 }
 0x1b2   :  { %v488_v25 = vcombine.low %v464_v20, %v480_v22  ;;  %v489_v26 = vcombine.high %v464_v20, %v480_v22  ;;  %v504_v27 = vcombine.low %v471_v21, %v487_v23  ;;  %v505_v28 = vcombine.high %v471_v21, %v487_v23 }
 0x1b3   :  { %v447_v31 = vpop.permute.xlu1 %446  ;;  %v532_v51 = vrot.slane %v524_v29, %v4921_v15  ;;  %v539_v43 = vrot.slane %v525_v30, %v4921_v15  ;;  %v1056_v23 = vrot.slane %v1048_v58, %v4921_v15 }
 0x1b4   :  { %v496_v34 = vrot.slane %v488_v25, %v4924_v18  ;;  %v503_v36 = vrot.slane %v489_v26, %v4924_v18  ;;  %v512_v37 = vrot.slane %v504_v27, %v4924_v18  ;;  %v519_v38 = vrot.slane %v505_v28, %v4924_v18 }
 0x1b5   :  { %v540_v39 = vcombine.low %v423_v11, %v447_v31  ;;  %v541_v40 = vcombine.high %v423_v11, %v447_v31  ;;  %v1037_v42 = vpop.permute.xlu0 %1036 }
 0x1b6   :  { %v728_v44 = vcombine.low %v496_v34, %v503_v36  ;;  %v4015_v45 = vcombine.high %v496_v34, %v503_v36  ;;  %v744_v47 = vcombine.low %v512_v37, %v519_v38  ;;  %v4016_v48 = vcombine.high %v512_v37, %v519_v38 }
 0x1b7   :  { %v548_v55 = vrot.slane %v540_v39, %v4921_v15  ;;  %v555_v56 = vrot.slane %v541_v40, %v4921_v15  ;;  %v1027_v57 = vpop.permute.xlu1 %1026  ;;  %v1064_v61 = vcombine.low %v1013_v24, %v1037_v42  ;;  %v1065_v1 = vcombine.high %v1013_v24, %v1037_v42 }
 0x1b8   :  { %v4945_v9 = vrot.slane %v728_v44, %v4921_v15  ;;  %v4948_v10 = vrot.slane %v4015_v45, %v4921_v15  ;;  %v4951_v11 = vrot.slane %v744_v47, %v4921_v15  ;;  %v4954_v12 = vrot.slane %v4016_v48, %v4921_v15 }
 0x1b9   :  { %v556_v2 = vcombine.low %v532_v51, %v548_v55  ;;  %v557_v3 = vcombine.high %v532_v51, %v548_v55  ;;  %v572_v4 = vcombine.low %v539_v43, %v555_v56  ;;  %v573_v5 = vcombine.high %v539_v43, %v555_v56  ;;  %v1015_v8 = vpop.permute.xlu0 %1014 }
 0x1ba   :  { %v1063_v24 = vrot.slane %v1049_v60, %v4921_v15  ;;  %v1072_v25 = vrot.slane %v1064_v61, %v4921_v15  ;;  %v1079_v26 = vrot.slane %v1065_v1, %v4921_v15  ;;  %v760_v27 = vcombine.low %v4945_v9, %v4948_v10 }
 0x1bb   :  { %v564_v41 = vrot.slane %v556_v2, %v4924_v18  ;;  %v571_v6 = vrot.slane %v557_v3, %v4924_v18  ;;  %v580_v13 = vrot.slane %v572_v4, %v4924_v18  ;;  %v587_v14 = vrot.slane %v573_v5, %v4924_v18  ;;  %v1039_v16 = vpop.permute.xlu1 %1038 }
 0x1bc   :  { %v776_v28 = vcombine.low %v4951_v11, %v4954_v12  ;;  %v1080_v30 = vcombine.low %v1056_v23, %v1072_v25  ;;  %v1081_v31 = vcombine.high %v1056_v23, %v1072_v25  ;;  %v1096_v34 = vcombine.low %v1063_v24, %v1079_v26 }
 0x1bd   :  { %v796_v17 = vcombine.low %v564_v41, %v571_v6  ;;  %v4017_v19 = vcombine.high %v564_v41, %v571_v6  ;;  %v812_v20 = vcombine.low %v580_v13, %v587_v14  ;;  %v4018_v21 = vcombine.high %v580_v13, %v587_v14  ;;  %v4960_v22 = vpop.permute.xlu0 %424 }
 0x1be   :  { %v1097_v36 = vcombine.high %v1063_v24, %v1079_v26  ;;  %v1088_v44 = vrot.slane %v1080_v30, %v4924_v18  ;;  %v1095_v45 = vrot.slane %v1081_v31, %v4924_v18  ;;  %v1104_v47 = vrot.slane %v1096_v34, %v4924_v18 }
 0x1bf   :  { %v4970_v29 = vpop.permute.xlu1 %426  ;;  %v4973_v37 = vrot.slane %v796_v17, %v4921_v15  ;;  %v4976_v38 = vrot.slane %v4017_v19, %v4921_v15  ;;  %v4979_v39 = vrot.slane %v812_v20, %v4921_v15  ;;  %v4982_v40 = vrot.slane %v4018_v21, %v4921_v15 }
 0x1c0   :  { %v1111_v48 = vrot.slane %v1097_v36, %v4924_v18  ;;  %v1116_v51 = vcombine.low %v4843_v46, %v1027_v57  ;;  %v1117_v43 = vcombine.high %v4843_v46, %v1027_v57  ;;  %v4991_v56 = vrot.slane %v760_v27, %v4924_v18 }
 0x1c1   :  { %v1017_v42 = vpop.permute.xlu0 %1016  ;;  %v4994_v58 = vrot.slane %v776_v28, %v4924_v18  ;;  %v828_v60 = vcombine.low %v4973_v37, %v4976_v38  ;;  %v844_v61 = vcombine.low %v4979_v39, %v4982_v40  ;;  %v1132_v1 = vcombine.low %v1015_v8, %v1039_v16 }
 0x1c2   :  { %v1133_v2 = vcombine.high %v1015_v8, %v1039_v16  ;;  %v1320_v4 = vcombine.low %v1088_v44, %v1095_v45  ;;  %v4023_v5 = vcombine.high %v1088_v44, %v1095_v45  ;;  %v1336_v41 = vcombine.low %v1104_v47, %v1111_v48 }
 0x1c3   :  { %v1019_v55 = vpop.permute.xlu1 %1018  ;;  %v4024_v46 = vcombine.high %v1104_v47, %v1111_v48  ;;  %v1124_v57 = vrot.slane %v1116_v51, %v4921_v15  ;;  %v1131_v6 = vrot.slane %v1117_v43, %v4921_v15  ;;  %v1140_v13 = vrot.slane %v1132_v1, %v4921_v15 }
 0x1c4   :  { %v1147_v14 = vrot.slane %v1133_v2, %v4921_v15  ;;  %v5009_v27 = vrot.slane %v1320_v4, %v4921_v15  ;;  %v5012_v28 = vrot.slane %v4023_v5, %v4921_v15  ;;  %v5015_v30 = vrot.slane %v1336_v41, %v4921_v15 }
 0x1c5   :  { %v1029_v3 = vpop.permute.xlu0 %1028  ;;  %v1148_v21 = vcombine.low %v1124_v57, %v1140_v13  ;;  %v1149_v23 = vcombine.high %v1124_v57, %v1140_v13 }
 0x1c6   :  { %v1184_v19 = vcombine.low %v4859_v52, %v1029_v3  ;;  %v1185_v20 = vcombine.high %v4859_v52, %v1029_v3  ;;  %v1164_v24 = vcombine.low %v1131_v6, %v1147_v14  ;;  %v1165_v25 = vcombine.high %v1131_v6, %v1147_v14 }
 0x1c7   :  { %v1031_v17 = vpop.permute.xlu1 %1030  ;;  %v5018_v52 = vrot.slane %v4024_v46, %v4921_v15  ;;  %v1156_v31 = vrot.slane %v1148_v21, %v4924_v18 }
 0x1c8   :  { %v1252_v8 = vcombine.low %v4863_v53, %v1031_v17  ;;  %v1253_v16 = vcombine.high %v4863_v53, %v1031_v17  ;;  %v1163_v53 = vrot.slane %v1149_v23, %v4924_v18  ;;  %v1172_v34 = vrot.slane %v1164_v24, %v4924_v18 }
 0x1c9   :  { %v1041_v26 = vpop.permute.xlu0 %1040  ;;  %v1179_v36 = vrot.slane %v1165_v25, %v4924_v18  ;;  %v1192_v43 = vrot.slane %v1184_v19, %v4921_v15  ;;  %v1199_v1 = vrot.slane %v1185_v20, %v4921_v15 }
 0x1ca   :  { %v1200_v45 = vcombine.low %v1017_v42, %v1041_v26  ;;  %v1201_v47 = vcombine.high %v1017_v42, %v1041_v26  ;;  %v1260_v2 = vrot.slane %v1252_v8, %v4921_v15  ;;  %v1267_v3 = vrot.slane %v1253_v16, %v4921_v15 }
 0x1cb   :  { %v1043_v44 = vpop.permute.xlu1 %1042  ;;  %v1388_v57 = vcombine.low %v1156_v31, %v1163_v53  ;;  %v4025_v42 = vcombine.high %v1156_v31, %v1163_v53  ;;  %v1404_v6 = vcombine.low %v1172_v34, %v1179_v36 }
 0x1cc   :  { %v1268_v48 = vcombine.low %v1019_v55, %v1043_v44  ;;  %v1269_v51 = vcombine.high %v1019_v55, %v1043_v44  ;;  %v1208_v4 = vrot.slane %v1200_v45, %v4921_v15  ;;  %v1215_v5 = vrot.slane %v1201_v47, %v4921_v15 }
 0x1cd   :  { %v4026_v55 = vcombine.high %v1172_v34, %v1179_v36  ;;  %v437_v44 = vpop.permute.xlu0 %436  ;;  %v5052_v47 = vrot.slane %v828_v60, %v4924_v18  ;;  %v5074_v60 = vrot.slane %v844_v61, %v4924_v18 }
 0x1ce   :  { %v1276_v41 = vrot.slane %v1268_v48, %v4921_v15  ;;  %v1283_v46 = vrot.slane %v1269_v51, %v4921_v15  ;;  %v1216_v13 = vcombine.low %v1192_v43, %v1208_v4  ;;  %v1217_v14 = vcombine.high %v1192_v43, %v1208_v4 }
 0x1cf   :  { %v1232_v17 = vcombine.low %v1199_v1, %v1215_v5  ;;  %v1233_v19 = vcombine.high %v1199_v1, %v1215_v5  ;;  %v439_v45 = vpop.permute.xlu1 %438  ;;  %v1352_v51 = vcombine.low %v5009_v27, %v5012_v28  ;;  %v1368_v43 = vcombine.low %v5015_v30, %v5018_v52 }
 0x1d0   :  { %v1284_v20 = vcombine.low %v1260_v2, %v1276_v41  ;;  %v1285_v8 = vcombine.high %v1260_v2, %v1276_v41  ;;  %v1300_v21 = vcombine.low %v1267_v3, %v1283_v46  ;;  %v1301_v16 = vcombine.high %v1267_v3, %v1283_v46 }
 0x1d1   :  { %v1224_v23 = vrot.slane %v1216_v13, %v4924_v18  ;;  %v1231_v24 = vrot.slane %v1217_v14, %v4924_v18  ;;  %v1240_v25 = vrot.slane %v1232_v17, %v4924_v18  ;;  %v1247_v26 = vrot.slane %v1233_v19, %v4924_v18  ;;  %v449_v19 = vpop.permute.xlu0 %448 }
 0x1d2   :  { %v5037_v31 = vrot.slane %v1284_v20, %v4924_v18  ;;  %v5040_v53 = vrot.slane %v1285_v8, %v4924_v18  ;;  %v5043_v34 = vrot.slane %v1300_v21, %v4924_v18  ;;  %v5046_v36 = vrot.slane %v1301_v16, %v4924_v18 }
 0x1d3   :  { %v1456_v48 = vcombine.low %v1224_v23, %v1231_v24  ;;  %v5059_v1 = vrot.slane %v1388_v57, %v4921_v15  ;;  %v5062_v2 = vrot.slane %v4025_v42, %v4921_v15  ;;  %v5065_v3 = vrot.slane %v1404_v6, %v4921_v15 }
 0x1d4   :  { %v5068_v4 = vrot.slane %v4026_v55, %v4921_v15  ;;  %v4027_v5 = vcombine.high %v1224_v23, %v1231_v24  ;;  %v1472_v41 = vcombine.low %v1240_v25, %v1247_v26  ;;  %v4028_v46 = vcombine.high %v1240_v25, %v1247_v26  ;;  %v451_v23 = vpop.permute.xlu1 %450 }
 0x1d5   :  { %v5085_v13 = vrot.slane %v1456_v48, %v4921_v15  ;;  %v592_v61 = vcombine.low %v4851_v49, %v437_v44  ;;  %v593_v14 = vcombine.high %v4851_v49, %v437_v44  ;;  %v660_v17 = vcombine.low %v4855_v50, %v439_v45 }
 0x1d6   :  { %v5091_v20 = vrot.slane %v1352_v51, %v4924_v18  ;;  %v1376_v8 = vrot.slane %v1368_v43, %v4924_v18  ;;  %v1420_v21 = vcombine.low %v5059_v1, %v5062_v2  ;;  %v1436_v16 = vcombine.low %v5065_v3, %v5068_v4 }
 0x1d7   :  { %v5099_v24 = vrot.slane %v4027_v5, %v4921_v15  ;;  %v5102_v49 = vrot.slane %v1472_v41, %v4921_v15  ;;  %v5105_v25 = vrot.slane %v4028_v46, %v4921_v15  ;;  %v661_v26 = vcombine.high %v4855_v50, %v439_v45 }
 0x1d8   :  { %v600_v44 = vrot.slane %v592_v61, %v4921_v15  ;;  %v1428_v48 = vrot.slane %v1420_v21, %v4924_v18  ;;  %v1444_v51 = vrot.slane %v1436_v16, %v4924_v18  ;;  %v608_v43 = vcombine.low %v4960_v22, %v449_v19 }
 0x1d9   :  { %v607_v33 = vrot.slane %v593_v14, %v4921_v15  ;;  %v609_v5 = vcombine.high %v4960_v22, %v449_v19  ;;  %v676_v41 = vcombine.low %v4970_v29, %v451_v23  ;;  %v677_v35 = vcombine.high %v4970_v29, %v451_v23 }
 0x1da   :  { %v668_v46 = vrot.slane %v660_v17, %v4921_v15  ;;  %v1384_v50 = vcombine.low %v5091_v20, %v1376_v8  ;;  %v1452_v45 = vcombine.low %v1428_v48, %v1444_v51  ;;  %v616_v61 = vrot.slane %v608_v43, %v4921_v15 }
 0x1db   :  { %v675_v21 = vrot.slane %v661_v26, %v4921_v15  ;;  %v623_v16 = vrot.slane %v609_v5, %v4921_v15  ;;  %v684_v0 = vrot.slane %v676_v41, %v4921_v15  ;;  %v691_v14 = vrot.slane %v677_v35, %v4921_v15 }
 0x1dc   :  { %v1592_v22 = vpack.c.bf16 %v1452_v45, %v1384_v50  ;;  %v624_v19 = vcombine.low %v600_v44, %v616_v61  ;;  %v625_v55 = vcombine.high %v600_v44, %v616_v61  ;;  %v792_v29 = vcombine.low %v4991_v56, %v4994_v58 }
 0x1dd   :  { %v640_v17 = vcombine.low %v607_v33, %v623_v16  ;;  %v641_v23 = vcombine.high %v607_v33, %v623_v16  ;;  %v692_v6 = vcombine.low %v668_v46, %v684_v0  ;;  %v693_v42 = vcombine.high %v668_v46, %v684_v0 }
 0x1de   :  { %v2197_v43 = vsel %vm2192_vm1, %v1592_v22, 0  ;;  %v632_v26 = vrot.slane %v624_v19, %v4924_v18  ;;  %v639_v5 = vrot.slane %v625_v55, %v4924_v18  ;;  %v708_v57 = vcombine.low %v675_v21, %v691_v14 }
 0x1df   :  { %4218 = vmatpush3.bf16.xpose.msra.mxu1 %v2197_v43  ;;  %v648_v35 = vrot.slane %v640_v17, %v4924_v18  ;;  %v655_v41 = vrot.slane %v641_v23, %v4924_v18  ;;  %v700_v44 = vrot.slane %v692_v6, %v4924_v18  ;;  %v707_v50 = vrot.slane %v693_v42, %v4924_v18 }
 0x1e0   :  { %v709_v45 = vcombine.high %v675_v21, %v691_v14  ;;  %v716_v33 = vrot.slane %v708_v57, %v4924_v18  ;;  %v860_v0 = vcombine.low %v5052_v47, %v5074_v60  ;;  %4229 = vmatprep.subr.bf16.mxu1 %v4698_v54  ;;  %v1453_v46 = vcombine.high %v1428_v48, %v1444_v51 }
 0x1e1   :  { %v864_v55 = vcombine.low %v632_v26, %v639_v5  ;;  %v4019_v61 = vcombine.high %v632_v26, %v639_v5  ;;  %v932_v16 = vcombine.low %v700_v44, %v707_v50  ;;  %v4021_v22 = vcombine.high %v700_v44, %v707_v50 }
 0x1e2   :  { %v880_v19 = vcombine.low %v648_v35, %v655_v41  ;;  %v4020_v17 = vcombine.high %v648_v35, %v655_v41  ;;  %v723_v23 = vrot.slane %v709_v45, %v4924_v18  ;;  %v1385_v6 = vcombine.high %v5091_v20, %v1376_v8 }
 0x1e3   :  { %v5718_v57 = vcombine.low %v5037_v31, %v5040_v53  ;;  %v5719_v48 = vcombine.high %v5037_v31, %v5040_v53  ;;  %v5151_v21 = vrot.slane %v932_v16, %v4921_v15  ;;  %v5154_v14 = vrot.slane %v4021_v22, %v4921_v15 }
 0x1e4   :  { %v948_v43 = vcombine.low %v716_v33, %v723_v23  ;;  %v4022_v20 = vcombine.high %v716_v33, %v723_v23  ;;  %v1000_v8 = vpack.c.bf16 %v860_v0, %v792_v29  ;;  %v1594_v26 = vpack.c.bf16 %v1453_v46, %v1385_v6 }
 0x1e5   :  { %v5142_v42 = vrot.slane %v5718_v57, %v4921_v15  ;;  %v5148_v51 = vrot.slane %v5719_v48, %v4921_v15  ;;  %v5720_v5 = vcombine.low %v5043_v34, %v5046_v36  ;;  %v5721_v31 = vcombine.high %v5043_v34, %v5046_v36 }
 0x1e6   :  { %v5169_v41 = vrot.slane %v864_v55, %v4921_v15  ;;  %v5172_v44 = vrot.slane %v4019_v61, %v4921_v15  ;;  %v5175_v29 = vrot.slane %v880_v19, %v4921_v15  ;;  %v5178_v50 = vrot.slane %v4020_v17, %v4921_v15  ;;  %4220 = vmatmul.mubr.msk.bf16.vlgmr.msra.gmra.mxu1 %vm2192_vm1, %v1000_v8 }
 0x1e7   :  { %v5160_v35 = vrot.slane %v5720_v5, %v4921_v15  ;;  %v5166_v53 = vrot.slane %v5721_v31, %v4921_v15  ;;  %v5181_v45 = vrot.slane %v948_v43, %v4921_v15  ;;  %v5184_v33 = vrot.slane %v4022_v20, %v4921_v15  ;;  %4231 = vmatprep.mubr.msk.bf16.mxu1 %vm4699_vm0, %v4698_v54 }
 0x1e8   :  { %v964_v34 = vcombine.low %v5151_v21, %v5154_v14  ;;  %v829_v36 = vcombine.high %v4973_v37, %v4976_v38  ;;  %v845_v0 = vcombine.high %v4979_v39, %v4982_v40  ;;  %v2291_v46 = vsel %vm2192_vm1, %v1594_v26, 0 }
 0x1e9   :  { %v896_v55 = vcombine.low %v5169_v41, %v5172_v44  ;;  %v980_v61 = vcombine.low %v5181_v45, %v5184_v33  ;;  %4230 = vmatpush3.bf16.xpose.msra.mxu1 %v2291_v46  ;;  %v1488_v16 = vcombine.low %v5085_v13, %v5099_v24  ;;  %v1504_v22 = vcombine.low %v5102_v49, %v5105_v25 }
 0x1ea   :  { %v912_v37 = vcombine.low %v5175_v29, %v5178_v50  ;;  %v861_v38 = vcombine.high %v5052_v47, %v5074_v60  ;;  %4241 = vmatprep.subr.bf16.mxu1 %v4698_v54  ;;  %v1556_v39 = vcombine.low %v5142_v42, %v5148_v51  ;;  %v1572_v40 = vcombine.low %v5160_v35, %v5166_v53 }
 0x1eb   :  { %v5214_v19 = vrot.slane %v964_v34, %v4924_v18  ;;  %v1496_v17 = vrot.slane %v1488_v16, %v4924_v18  ;;  %v1512_v23 = vrot.slane %v1504_v22, %v4924_v18  ;;  %v1353_v6 = vcombine.high %v5009_v27, %v5012_v28 }
 0x1ec   :  { %v793_v47 = vcombine.high %v4991_v56, %v4994_v58  ;;  %v1564_v60 = vrot.slane %v1556_v39, %v4924_v18  ;;  %v1580_v57 = vrot.slane %v1572_v40, %v4924_v18  ;;  %v1369_v48 = vcombine.high %v5015_v30, %v5018_v52 }
 0x1ed   :  { %v5227_v43 = vrot.slane %v980_v61, %v4924_v18  ;;  %v1367_v20 = vrot.slane %v1353_v6, %v4924_v18  ;;  %v1421_v8 = vcombine.high %v5059_v1, %v5062_v2  ;;  %v1437_v27 = vcombine.high %v5065_v3, %v5068_v4 }
 0x1ee   :  { %v1002_v28 = vpack.c.bf16 %v861_v38, %v793_v47  ;;  %v1520_v56 = vcombine.low %v1496_v17, %v1512_v23  ;;  %v1588_v58 = vcombine.low %v1564_v60, %v1580_v57  ;;  %v1383_v26 = vrot.slane %v1369_v48, %v4924_v18 }
 0x1ef   :  { %v5236_v5 = vrot.slane %v896_v55, %v4924_v18  ;;  %v5239_v30 = vrot.slane %v912_v37, %v4924_v18  ;;  %v1435_v52 = vrot.slane %v1421_v8, %v4924_v18  ;;  %v1451_v31 = vrot.slane %v1437_v27, %v4924_v18 }
 0x1f0   :  { %4232 = vmatmul.mubr.msk.bf16.vlgmr.msra.gmra.mxu1 %vm2192_vm1, %v1002_v28  ;;  %v1593_v1 = vpack.c.bf16 %v1588_v58, %v1520_v56  ;;  %v761_v2 = vcombine.high %v4945_v9, %v4948_v10  ;;  %v777_v3 = vcombine.high %v4951_v11, %v4954_v12  ;;  %v1386_v4 = vcombine.low %v1367_v20, %v1383_v26 }
 0x1f1   :  { %v1454_v34 = vcombine.low %v1435_v52, %v1451_v31  ;;  %4243 = vmatprep.mubr.msk.bf16.mxu1 %vm4699_vm0, %v4698_v54  ;;  %v996_v46 = vcombine.low %v5214_v19, %v5227_v43  ;;  %v1589_v61 = vcombine.high %v1564_v60, %v1580_v57  ;;  %v843_v16 = vrot.slane %v829_v36, %v4924_v18 }
 0x1f2   :  { %v2244_v55 = vsel %vm2192_vm1, %v1593_v1, 0  ;;  %v859_v22 = vrot.slane %v845_v0, %v4924_v18  ;;  %v928_v9 = vcombine.low %v5236_v5, %v5239_v30  ;;  %v1521_v11 = vcombine.high %v1496_v17, %v1512_v23 }
 0x1f3   :  { %4224 = vmatpush3.bf16.xpose.msra.mxu0 %v2244_v55  ;;  %v1596_v10 = vpack.c.bf16 %v1454_v34, %v1386_v4  ;;  %v1489_v12 = vcombine.high %v5085_v13, %v5099_v24  ;;  %v1505_v37 = vcombine.high %v5102_v49, %v5105_v25  ;;  %v1557_v38 = vcombine.high %v5142_v42, %v5148_v51  ;;  %v1605_v4 = vpop.permute.xlu1 %1604 }
 0x1f4   :  { %4235 = vmatprep.subr.bf16.mxu0 %v4698_v54  ;;  %v775_v36 = vrot.slane %v761_v2, %v4924_v18  ;;  %v791_v0 = vrot.slane %v777_v3, %v4924_v18  ;;  %v1455_v40 = vcombine.high %v1435_v52, %v1451_v31  ;;  %v1001_v6 = vpack.c.bf16 %v996_v46, %v928_v9  ;;  %v1607_v46 = vpop.permute.xlu0 %1606 }
 0x1f5   :  { %v2385_v39 = vsel %vm2192_vm1, %v1596_v10, 0  ;;  %v1595_v47 = vpack.c.bf16 %v1589_v61, %v1521_v11  ;;  %v1571_v17 = vrot.slane %v1557_v38, %v4924_v18  ;;  %v1573_v13 = vcombine.high %v5160_v35, %v5166_v53 }
 0x1f6   :  { %4242 = vmatpush3.bf16.xpose.msra.mxu1 %v2385_v39  ;;  %v862_v24 = vcombine.low %v843_v16, %v859_v22  ;;  %v1387_v49 = vcombine.high %v1367_v20, %v1383_v26  ;;  %v1503_v25 = vrot.slane %v1489_v12, %v4924_v18  ;;  %v1519_v42 = vrot.slane %v1505_v37, %v4924_v18 }
 0x1f7   :  { %4253 = vmatprep.subr.bf16.mxu1 %v4698_v54  ;;  %v1587_v51 = vrot.slane %v1573_v13, %v4924_v18  ;;  %v794_v23 = vcombine.low %v775_v36, %v791_v0  ;;  %v2338_v57 = vsel %vm2192_vm1, %v1595_v47, 0  ;;  %v965_v35 = vcombine.high %v5151_v21, %v5154_v14  ;;  %v1617_v61 = vpop.permute.xlu1 %1616 }
 0x1f8   :  { %v1598_v60 = vpack.c.bf16 %v1455_v40, %v1387_v49  ;;  %v981_v53 = vcombine.high %v5181_v45, %v5184_v33  ;;  %v997_v20 = vcombine.high %v5214_v19, %v5227_v43  ;;  %v1522_v27 = vcombine.low %v1503_v25, %v1519_v42  ;;  %v1629_v10 = vpop.permute.xlu0 %1628 }
 0x1f9   :  { %v1590_v48 = vcombine.low %v1571_v17, %v1587_v51  ;;  %v1004_v8 = vpack.c.bf16 %v862_v24, %v794_v23  ;;  %v897_v28 = vcombine.high %v5169_v41, %v5172_v44  ;;  %v913_v58 = vcombine.high %v5175_v29, %v5178_v50 }
 0x1fa   :  { %4226 = vmatmul.mubr.msk.bf16.vlgmr.msra.gmra.mxu0 %vm2192_vm1, %v1001_v6  ;;  %v2479_v56 = vsel %vm2192_vm1, %v1598_v60, 0  ;;  %v929_v21 = vcombine.high %v5236_v5, %v5239_v30  ;;  %v863_v45 = vcombine.high %v843_v16, %v859_v22  ;;  %v979_v41 = vrot.slane %v965_v35, %v4924_v18 }
 0x1fb   :  { %4236 = vmatpush3.bf16.xpose.msra.mxu0 %v2338_v57  ;;  %4237 = vmatprep.mubr.msk.bf16.mxu0 %vm4699_vm0, %v4698_v54  ;;  %v1597_v14 = vpack.c.bf16 %v1590_v48, %v1522_v27  ;;  %v995_v44 = vrot.slane %v981_v53, %v4924_v18  ;;  %v795_v19 = vcombine.high %v775_v36, %v791_v0  ;;  %v1619_v37 = vpop.permute.xlu1 %1618 }
 0x1fc   :  { %4247 = vmatprep.subr.bf16.mxu0 %v4698_v54  ;;  %v1003_v33 = vpack.c.bf16 %v997_v20, %v929_v21  ;;  %v911_v43 = vrot.slane %v897_v28, %v4924_v18  ;;  %v927_v29 = vrot.slane %v913_v58, %v4924_v18  ;;  %v1591_v26 = vcombine.high %v1571_v17, %v1587_v51 }
 0x1fd   :  { %4244 = vmatmul.mubr.msk.bf16.vlgmr.msra.gmra.mxu1 %vm2192_vm1, %v1004_v8  ;;  %v2432_v50 = vsel %vm2192_vm1, %v1597_v14, 0  ;;  %v1006_v5 = vpack.c.bf16 %v863_v45, %v795_v19  ;;  %v998_v30 = vcombine.low %v979_v41, %v995_v44  ;;  %v1523_v52 = vcombine.high %v1503_v25, %v1519_v42 }
 0x1fe   :  { %4254 = vmatpush3.bf16.xpose.msra.mxu1 %v2479_v56  ;;  %4255 = vmatprep.mubr.msk.bf16.mxu1 %vm4699_vm0, %v4698_v54  ;;  %v930_v31 = vcombine.low %v911_v43, %v927_v29  ;;  %v999_v34 = vcombine.high %v979_v41, %v995_v44  ;;  %v931_v55 = vcombine.high %v911_v43, %v927_v29 }
 0x1ff   :  { %4265 = vmatprep.subr.bf16.mxu1 %v4698_v54  ;;  %v1599_v1 = vpack.c.bf16 %v1591_v26, %v1523_v52  ;;  %v1640_v16 = vcombine.low %v4892_v59, %v1617_v61  ;;  %v1641_v22 = vcombine.high %v4892_v59, %v1617_v61  ;;  %v1656_v38 = vcombine.low %v1605_v4, %v1629_v10  ;;  %v1631_v6 = vpop.permute.xlu1 %1630 }
 0x200   :  { %v1005_v2 = vpack.c.bf16 %v998_v30, %v930_v31  ;;  %v1007_v9 = vpack.c.bf16 %v999_v34, %v931_v55  ;;  %v1657_v36 = vcombine.high %v1605_v4, %v1629_v10  ;;  %v1708_v0 = vcombine.low %v4896_v62, %v1619_v37 }
 0x201   :  { %v2526_v3 = vsel %vm2192_vm1, %v1599_v1, 0  ;;  %v1648_v11 = vrot.slane %v1640_v16, %v4921_v15  ;;  %v1655_v12 = vrot.slane %v1641_v22, %v4921_v15  ;;  %v1709_v39 = vcombine.high %v4896_v62, %v1619_v37 }
 0x202   :  { %4238 = vmatmul.mubr.msk.bf16.vlgmr.msra.gmra.mxu0 %vm2192_vm1, %v1003_v33  ;;  %v1664_v59 = vrot.slane %v1656_v38, %v4921_v15  ;;  %v1671_v40 = vrot.slane %v1657_v36, %v4921_v15  ;;  %v1716_v49 = vrot.slane %v1708_v0, %v4921_v15  ;;  %v1724_v42 = vcombine.low %v1607_v46, %v1631_v6 }
 0x203   :  { %4248 = vmatpush3.bf16.xpose.msra.mxu0 %v2432_v50  ;;  %4249 = vmatprep.mubr.msk.bf16.mxu0 %vm4699_vm0, %v4698_v54  ;;  %v1723_v25 = vrot.slane %v1709_v39, %v4921_v15  ;;  %v1725_v51 = vcombine.high %v1607_v46, %v1631_v6 }
 0x204   :  { %4259 = vmatprep.subr.bf16.mxu0 %v4698_v54  ;;  %v1672_v47 = vcombine.low %v1648_v11, %v1664_v59  ;;  %v1673_v17 = vcombine.high %v1648_v11, %v1664_v59  ;;  %v1688_v13 = vcombine.low %v1655_v12, %v1671_v40  ;;  %v1689_v24 = vcombine.high %v1655_v12, %v1671_v40 }
 0x205   :  { %4256 = vmatmul.mubr.msk.bf16.vlgmr.msra.gmra.mxu1 %vm2192_vm1, %v1006_v5  ;;  %v1732_v62 = vrot.slane %v1724_v42, %v4921_v15  ;;  %v1739_v23 = vrot.slane %v1725_v51, %v4921_v15 }
 0x206   :  { %4267 = vmatprep.mubr.msk.bf16.mxu1 %vm4699_vm0, %v4698_v54  ;;  %v1680_v60 = vrot.slane %v1672_v47, %v4924_v18  ;;  %v1687_v57 = vrot.slane %v1673_v17, %v4924_v18  ;;  %v1696_v48 = vrot.slane %v1688_v13, %v4924_v18  ;;  %v1703_v8 = vrot.slane %v1689_v24, %v4924_v18 }
 0x207   :  { %v1740_v35 = vcombine.low %v1716_v49, %v1732_v62  ;;  %v1741_v53 = vcombine.high %v1716_v49, %v1732_v62  ;;  %v1756_v20 = vcombine.low %v1723_v25, %v1739_v23  ;;  %v1757_v27 = vcombine.high %v1723_v25, %v1739_v23  ;;  %v5359_v23 = vld [vmem:[#allocation5] ss:$0 sm:$0xff] }
 0x208   :  { %v1912_v14 = vcombine.low %v1680_v60, %v1687_v57  ;;  %v4031_v45 = vcombine.high %v1680_v60, %v1687_v57  ;;  %v1928_v41 = vcombine.low %v1696_v48, %v1703_v8  ;;  %v4032_v44 = vcombine.high %v1696_v48, %v1703_v8 }
 0x209   :  { %v1748_v28 = vrot.slane %v1740_v35, %v4924_v18  ;;  %v1755_v56 = vrot.slane %v1741_v53, %v4924_v18  ;;  %v1764_v58 = vrot.slane %v1756_v20, %v4924_v18  ;;  %v1771_v21 = vrot.slane %v1757_v27, %v4924_v18 }
 0x20a   :  { %4250 = vmatmul.mubr.msk.bf16.vlgmr.msra.gmra.mxu0 %vm2192_vm1, %v1005_v2  ;;  %v1919_v50 = vrot.slane %v1912_v14, %v4921_v15  ;;  %v1927_v26 = vrot.slane %v4031_v45, %v4921_v15  ;;  %v1935_v5 = vrot.slane %v1928_v41, %v4921_v15  ;;  %v1943_v30 = vrot.slane %v4032_v44, %v4921_v15 }
 0x20b   :  { %4260 = vmatpush3.bf16.xpose.msra.mxu0 %v2526_v3  ;;  %4261 = vmatprep.mubr.msk.bf16.mxu0 %vm4699_vm0, %v4698_v54  ;;  %v1980_v33 = vcombine.low %v1748_v28, %v1755_v56  ;;  %v4033_v19 = vcombine.high %v1748_v28, %v1755_v56  ;;  %v1996_v43 = vcombine.low %v1764_v58, %v1771_v21 }
 0x20c   :  { %4271 = vmatprep.subr.bf16.mxu0 %v4698_v54  ;;  %v4034_v29 = vcombine.high %v1764_v58, %v1771_v21  ;;  %v1944_v3 = vcombine.low %v1919_v50, %v1927_v26  ;;  %v1960_v4 = vcombine.low %v1935_v5, %v1943_v30  ;;  %v1945_v12 = vcombine.high %v1919_v50, %v1927_v26 }
 0x20d   :  { %v1987_v52 = vrot.slane %v1980_v33, %v4921_v15  ;;  %v1995_v31 = vrot.slane %v4033_v19, %v4921_v15  ;;  %v2003_v1 = vrot.slane %v1996_v43, %v4921_v15  ;;  %v1961_v37 = vcombine.high %v1935_v5, %v1943_v30  ;;  %v5376_v19 = vld [vmem:[#allocation5 + $0x1] ss:$0 sm:$0xff] }
 0x20e   :  { %v2011_v2 = vrot.slane %v4034_v29, %v4921_v15  ;;  %v1952_v55 = vrot.slane %v1944_v3, %v4924_v18  ;;  %v1968_v61 = vrot.slane %v1960_v4, %v4924_v18  ;;  %v1959_v0 = vrot.slane %v1945_v12, %v4924_v18 }
 0x20f   :  { %v2012_v34 = vcombine.low %v1987_v52, %v1995_v31  ;;  %v2013_v38 = vcombine.high %v1987_v52, %v1995_v31  ;;  %v1975_v39 = vrot.slane %v1961_v37, %v4924_v18 }
 0x210   :  { %v2028_v46 = vcombine.low %v2003_v1, %v2011_v2  ;;  %v2029_v36 = vcombine.high %v2003_v1, %v2011_v2  ;;  %v1977_v6 = vcombine.high %v1952_v55, %v1968_v61 }
 0x211   :  { %v2020_v16 = vrot.slane %v2012_v34, %v4924_v18  ;;  %v2027_v59 = vrot.slane %v2013_v38, %v4924_v18  ;;  %v1978_v17 = vcombine.low %v1959_v0, %v1975_v39  ;;  %v1979_v24 = vcombine.high %v1959_v0, %v1975_v39 }
 0x212   :  { %4262 = vmatmul.mubr.msk.bf16.vlgmr.msra.gmra.mxu0 %vm2192_vm1, %v1007_v9  ;;  %v2036_v22 = vrot.slane %v2028_v46, %v4924_v18  ;;  %v1976_v9 = vcombine.low %v1952_v55, %v1968_v61  ;;  %v2043_v40 = vrot.slane %v2029_v36, %v4924_v18 }
 0x213   :  { %4273 = vmatprep.mubr.msk.bf16.mxu0 %vm4699_vm0, %v4698_v54 }
 0x214   :  { %v2044_v10 = vcombine.low %v2020_v16, %v2036_v22  ;;  %v2045_v47 = vcombine.high %v2020_v16, %v2036_v22  ;;  %v2046_v13 = vcombine.low %v2027_v59, %v2043_v40  ;;  %v2047_v49 = vcombine.high %v2027_v59, %v2043_v40 }
 0x216   :  { %v2184_v11 = vpack.c.bf16 %v2044_v10, %v1976_v9  ;;  %v5353_v25 = vpack.c.bf16 %v2045_v47, %v1977_v6  ;;  %v5355_v42 = vpack.c.bf16 %v2046_v13, %v1978_v17  ;;  %v5357_v51 = vpack.c.bf16 %v2047_v49, %v1979_v24 }
 0x218   :  { %4266 = vmatpush3.bf16.msra.mxu1 %v2184_v11 }
 0x219   :  { %4277 = vmatprep.subr.bf16.mxu1 %v4698_v54 }
 0x2a6   :  { %v2233_v62 = vpop.f32.mrf.mxu1 }
 0x2a7   :  { %v2569_v60 = vmul.f32 0.17677669, %v2233_v62 }
 0x2a8   :  { %v4221_v57 = vpop.f32.mrf.mxu1 }
 0x2a9   :  { %v5362_v48 = vadd.f32 %v5359_v23, %v2569_v60 }
 0x2aa   :  { %v2236_v8 = vpop.f32.mrf.mxu1 }
 0x2ab   :  { %v2570_v35 = vmul.f32 0.17677669, %v2236_v8  ;;  %v2616_v53 = vsel %vm2615_vm2, %v5362_v48, -inf }
 0x2ac   :  { %2617 = vmax.xlane.f32.xlu0 %v2616_v53  ;;  %v4222_v20 = vpop.f32.mrf.mxu1 }
 0x2ad   :  { %v5367_v27 = vadd.f32 %v5359_v23, %v2570_v35 }
 0x2af   :  { %v2619_v28 = vsel %vm2615_vm2, %v5367_v27, -inf }
 0x2b0   :  { %v2327_v56 = vpop.f32.mrf.mxu1  ;;  %2620 = vmax.xlane.f32.xlu1 %v2619_v28 }
 0x2b1   :  { %v2573_v58 = vmul.f32 0.17677669, %v2327_v56 }
 0x2b2   :  { %v4233_v21 = vpop.f32.mrf.mxu1 }
 0x2b3   :  { %v5372_v14 = vadd.f32 %v5359_v23, %v2573_v58 }
 0x2b4   :  { %v2330_v45 = vpop.f32.mrf.mxu1 }
 0x2b5   :  { %v2628_v41 = vsel %vm2615_vm2, %v5372_v14, -inf  ;;  %v2574_v30 = vmul.f32 0.17677669, %v2330_v45 }
 0x2b6   :  { %2629 = vmax.xlane.f32.xlu1 %v2628_v41  ;;  %v4234_v44 = vpop.f32.mrf.mxu1 }
 0x2b7   :  { %v5389_v22 = vadd.f32 %v5359_v23, %v2574_v30 }
 0x2b9   :  { %v2631_v0 = vsel %vm2615_vm2, %v5389_v22, -inf }
 0x2ba   :  { %v2280_v33 = vpop.f32.mrf.mxu0 }
 0x2bb   :  { %v2571_v43 = vmul.f32 0.17677669, %v2280_v33 }
 0x2bc   :  { %v4227_v29 = vpop.f32.mrf.mxu0 }
 0x2bd   :  { %v2421_v50 = vpop.f32.mrf.mxu1  ;;  %v5379_v26 = vadd.f32 %v5376_v19, %v2571_v43 }
 0x2be   :  { %v2283_v5 = vpop.f32.mrf.mxu0  ;;  %v2577_v46 = vmul.f32 0.17677669, %v2421_v50 }
 0x2bf   :  { %v4245_v52 = vpop.f32.mrf.mxu1  ;;  %v2572_v31 = vmul.f32 0.17677669, %v2283_v5  ;;  %v2622_v1 = vsel %vm2615_vm2, %v5379_v26, -inf }
 0x2c0   :  { %2623 = vmax.xlane.f32.xlu0 %v2622_v1  ;;  %v4228_v2 = vpop.f32.mrf.mxu0  ;;  %v5399_v59 = vadd.f32 %v5359_v23, %v2577_v46  ;;  %v5449_v46 = vpop.permute.xlu0 %1608 }
 0x2c1   :  { %v2424_v3 = vpop.f32.mrf.mxu1  ;;  %v5384_v4 = vadd.f32 %v5376_v19, %v2572_v31 }
 0x2c2   :  { %v2374_v34 = vpop.f32.mrf.mxu0  ;;  %v2578_v12 = vmul.f32 0.17677669, %v2424_v3  ;;  %v2640_v60 = vsel %vm2615_vm2, %v5399_v59, -inf }
 0x2c3   :  { %v4246_v55 = vpop.f32.mrf.mxu1  ;;  %v2575_v61 = vmul.f32 0.17677669, %v2374_v34  ;;  %v2625_v16 = vsel %vm2615_vm2, %v5384_v4, -inf }
 0x2c4   :  { %2626 = vmax.xlane.f32.xlu0 %v2625_v16  ;;  %v4239_v9 = vpop.f32.mrf.mxu0  ;;  %v5405_v13 = vadd.f32 %v5359_v23, %v2578_v12  ;;  %v5451_v55 = vpop.permute.xlu1 %1610 }
 0x2c5   :  { %v2515_v10 = vpop.f32.mrf.mxu1  ;;  %v5392_v11 = vadd.f32 %v5376_v19, %v2575_v61 }
 0x2c6   :  { %v2377_v37 = vpop.f32.mrf.mxu0  ;;  %v2581_v24 = vmul.f32 0.17677669, %v2515_v10  ;;  %v2643_v20 = vsel %vm2615_vm2, %v5405_v13, -inf }
 0x2c7   :  { %v4257_v38 = vpop.f32.mrf.mxu1  ;;  %v2576_v36 = vmul.f32 0.17677669, %v2377_v37  ;;  %v2634_v39 = vsel %vm2615_vm2, %v5392_v11, -inf }
 0x2c8   :  { %2632 = vmax.xlane.f32.xlu0 %v2631_v0  ;;  %2635 = vmax.xlane.f32.xlu1 %v2634_v39  ;;  %v4240_v40 = vpop.f32.mrf.mxu0  ;;  %v5419_v21 = vadd.f32 %v5359_v23, %v2581_v24 }
 0x2c9   :  { %v2518_v6 = vpop.f32.mrf.mxu1  ;;  %v5402_v47 = vadd.f32 %v5376_v19, %v2576_v36 }
 0x2ca   :  { %v2468_v17 = vpop.f32.mrf.mxu0  ;;  %v2582_v28 = vmul.f32 0.17677669, %v2518_v6  ;;  %v2652_v43 = vsel %vm2615_vm2, %v5419_v21, -inf }
 0x2cb   :  { %v4258_v49 = vpop.f32.mrf.mxu1  ;;  %v2579_v62 = vmul.f32 0.17677669, %v2468_v17  ;;  %v2637_v57 = vsel %vm2615_vm2, %v5402_v47, -inf }
 0x2cc   :  { %2641 = vmax.xlane.f32.xlu1 %v2640_v60  ;;  %2638 = vmax.xlane.f32.xlu0 %v2637_v57  ;;  %v4251_v8 = vpop.f32.mrf.mxu0  ;;  %v5429_v50 = vadd.f32 %v5359_v23, %v2582_v28 }
 0x2cd   :  { %v5412_v35 = vadd.f32 %v5376_v19, %v2579_v62 }
 0x2ce   :  { %v2471_v53 = vpop.f32.mrf.mxu0  ;;  %v2655_v1 = vsel %vm2615_vm2, %v5429_v50, -inf }
 0x2cf   :  { %v2580_v56 = vmul.f32 0.17677669, %v2471_v53  ;;  %v2646_v58 = vsel %vm2615_vm2, %v5412_v35, -inf }
 0x2d0   :  { %2644 = vmax.xlane.f32.xlu0 %v2643_v20  ;;  %2647 = vmax.xlane.f32.xlu1 %v2646_v58  ;;  %v4252_v45 = vpop.f32.mrf.mxu0 }
 0x2d1   :  { %v5422_v41 = vadd.f32 %v5376_v19, %v2580_v56 }
 0x2d2   :  { %v2562_v44 = vpop.f32.mrf.mxu0 }
 0x2d3   :  { %v2583_v33 = vmul.f32 0.17677669, %v2562_v44  ;;  %v2649_v29 = vsel %vm2615_vm2, %v5422_v41, -inf }
 0x2d4   :  { %2653 = vmax.xlane.f32.xlu1 %v2652_v43  ;;  %2650 = vmax.xlane.f32.xlu0 %v2649_v29  ;;  %v4263_v5 = vpop.f32.mrf.mxu0 }
 0x2d5   :  { %v5432_v30 = vadd.f32 %v5376_v19, %v2583_v33 }
 0x2d6   :  { %v2565_v52 = vpop.f32.mrf.mxu0 }
 0x2d7   :  { %v2584_v31 = vmul.f32 0.17677669, %v2565_v52  ;;  %v2658_v2 = vsel %vm2615_vm2, %v5432_v30, -inf }
 0x2d8   :  { %2656 = vmax.xlane.f32.xlu0 %v2655_v1  ;;  %2659 = vmax.xlane.f32.xlu1 %v2658_v2  ;;  %v4264_v3 = vpop.f32.mrf.mxu0 }
 0x2d9   :  { %v5439_v23 = vadd.f32 %v5376_v19, %v2584_v31 }
 0x2db   :  { %v2661_v34 = vsel %vm2615_vm2, %v5439_v23, -inf }
 0x2dc   :  { %2662 = vmax.xlane.f32.xlu0 %v2661_v34 }
 0x2e9   :  { %1622 = vrot.lane.b32.xlu1 %v4912_v7, %s4685_s23 }
 0x2f2   :  { %1620 = vrot.lane.b32.xlu0 %v4902_v63, %s4685_s23 }
 0x2f6   :  { %1632 = vrot.lane.b32.xlu0 %v4902_v63, %s4697_s3 }
 0x335   :  { %v2618_v61 = vpop.xlane.xlu0 %2617 }
 0x336   :  { %v2664_v19 = vsub.f32 %v5362_v48, %v2618_v61 }
 0x338   :  { %v2680_v16 = vmul.f32 1.442695, %v2664_v19 }
 0x339   :  { %v2621_v9 = vpop.xlane.xlu1 %2620 }
 0x33a   :  { %4447 = vpow2.f32 %v2680_v16  ;;  %v2665_v10 = vsub.f32 %v5367_v27, %v2621_v9 }
 0x33c   :  { %v2682_v12 = vmul.f32 1.442695, %v2665_v10 }
 0x33e   :  { %4449 = vpow2.f32 %v2682_v12 }
 0x33f   :  { %v2630_v37 = vpop.xlane.xlu1 %2629 }
 0x340   :  { %v2668_v38 = vsub.f32 %v5372_v14, %v2630_v37 }
 0x342   :  { %v2688_v36 = vmul.f32 1.442695, %v2668_v38 }
 0x344   :  { %4451 = vpow2.f32 %v2688_v36 }
 0x347   :  { %v5456_v0 = vpop.eup %4447 }
 0x348   :  { %v2712_v39 = vsel %vm2615_vm2, %v5456_v0, 0.0 }
 0x349   :  { %v2624_v40 = vpop.xlane.xlu0 %2623  ;;  %2713 = vadd.xlane.f32.xlu1 %v2712_v39 }
 0x34a   :  { %v2666_v48 = vsub.f32 %v5379_v26, %v2624_v40 }
 0x34b   :  { %v5461_v6 = vpop.eup %4449 }
 0x34c   :  { %v2684_v17 = vmul.f32 1.442695, %v2666_v48  ;;  %v2715_v27 = vsel %vm2615_vm2, %v5461_v6, 0.0 }
 0x34d   :  { %v2627_v24 = vpop.xlane.xlu0 %2626  ;;  %2716 = vadd.xlane.f32.xlu0 %v2715_v27 }
 0x34e   :  { %4453 = vpow2.f32 %v2684_v17  ;;  %v2667_v14 = vsub.f32 %v5384_v4, %v2627_v24 }
 0x350   :  { %v2686_v49 = vmul.f32 1.442695, %v2667_v14 }
 0x351   :  { %v5466_v62 = vpop.eup %4451  ;;  %v2636_v60 = vpop.xlane.xlu1 %2635 }
 0x352   :  { %v2633_v57 = vpop.xlane.xlu0 %2632  ;;  %4455 = vpow2.f32 %v2686_v49  ;;  %v2670_v8 = vsub.f32 %v5392_v11, %v2636_v60  ;;  %v2724_v26 = vsel %vm2615_vm2, %v5466_v62, 0.0 }
 0x353   :  { %2725 = vadd.xlane.f32.xlu0 %v2724_v26  ;;  %v2669_v36 = vsub.f32 %v5389_v22, %v2633_v57 }
 0x354   :  { %v2692_v53 = vmul.f32 1.442695, %v2670_v8 }
 0x355   :  { %v2642_v12 = vpop.xlane.xlu1 %2641  ;;  %v2690_v48 = vmul.f32 1.442695, %v2669_v36 }
 0x356   :  { %v2639_v20 = vpop.xlane.xlu0 %2638  ;;  %4457 = vpow2.f32 %v2692_v53  ;;  %v2672_v17 = vsub.f32 %v5399_v59, %v2642_v12 }
 0x357   :  { %v2671_v28 = vsub.f32 %v5402_v47, %v2639_v20 }
 0x358   :  { %v2696_v24 = vmul.f32 1.442695, %v2672_v17 }
 0x359   :  { %v2694_v56 = vmul.f32 1.442695, %v2671_v28  ;;  %v2648_v40 = vpop.xlane.xlu1 %2647 }
 0x35a   :  { %v2645_v58 = vpop.xlane.xlu0 %2644  ;;  %v2674_v14 = vsub.f32 %v5412_v35, %v2648_v40 }
 0x35b   :  { %v2673_v4 = vsub.f32 %v5405_v13, %v2645_v58  ;;  %v5473_v45 = vpop.eup %4453  ;;  %4459 = vpow2.f32 %v2694_v56 }
 0x35c   :  { %v2718_v11 = vsel %vm2615_vm2, %v5473_v45, 0.0  ;;  %v2700_v49 = vmul.f32 1.442695, %v2674_v14 }
 0x35d   :  { %v2698_v44 = vmul.f32 1.442695, %v2673_v4  ;;  %2719 = vadd.xlane.f32.xlu1 %v2718_v11  ;;  %v2654_v27 = vpop.xlane.xlu1 %2653 }
 0x35e   :  { %v2651_v33 = vpop.xlane.xlu0 %2650  ;;  %v2676_v60 = vsub.f32 %v5419_v21, %v2654_v27 }
 0x35f   :  { %v2675_v43 = vsub.f32 %v5422_v41, %v2651_v33  ;;  %v5478_v29 = vpop.eup %4455  ;;  %4461 = vpow2.f32 %v2698_v44 }
 0x360   :  { %v2721_v47 = vsel %vm2615_vm2, %v5478_v29, 0.0  ;;  %v2704_v22 = vmul.f32 1.442695, %v2676_v60 }
 0x361   :  { %v2702_v5 = vmul.f32 1.442695, %v2675_v43  ;;  %2722 = vadd.xlane.f32.xlu0 %v2721_v47  ;;  %v2660_v8 = vpop.xlane.xlu1 %2659 }
 0x362   :  { %v2657_v13 = vpop.xlane.xlu0 %2656  ;;  %v2678_v57 = vsub.f32 %v5432_v30, %v2660_v8 }
 0x363   :  { %v2677_v52 = vsub.f32 %v5429_v50, %v2657_v13  ;;  %v5483_v31 = vpop.eup %4457  ;;  %4463 = vpow2.f32 %v2702_v5 }
 0x364   :  { %v2730_v2 = vsel %vm2615_vm2, %v5483_v31, 0.0  ;;  %v2708_v26 = vmul.f32 1.442695, %v2678_v57 }
 0x365   :  { %v2706_v1 = vmul.f32 1.442695, %v2677_v52  ;;  %2731 = vadd.xlane.f32.xlu0 %v2730_v2  ;;  %v1623_v11 = vpop.permute.xlu1 %1622 }
 0x366   :  { %v2663_v41 = vpop.xlane.xlu0 %2662  ;;  %v1845_v60 = vcombine.high %v4912_v7, %v1623_v11 }
 0x367   :  { %v2679_v3 = vsub.f32 %v5439_v23, %v2663_v41  ;;  %4465 = vpow2.f32 %v2706_v1 }
 0x368   :  { %v5488_v34 = vpop.eup %4459 }
 0x369   :  { %v2710_v61 = vmul.f32 1.442695, %v2679_v3  ;;  %v2733_v19 = vsel %vm2615_vm2, %v5488_v34, 0.0 }
 0x36a   :  { %2734 = vadd.xlane.f32.xlu0 %v2733_v19  ;;  %v1621_v44 = vpop.permute.xlu0 %1620 }
 0x36b   :  { %4467 = vpow2.f32 %v2710_v61  ;;  %v1776_v52 = vcombine.low %v4902_v63, %v1621_v44  ;;  %v1777_v1 = vcombine.high %v4902_v63, %v1621_v44 }
 0x36c   :  { %v5492_v50 = vpop.eup %4461  ;;  %4469 = vpow2.f32 %v2690_v48 }
 0x36d   :  { %v2739_v16 = vsel %vm2615_vm2, %v5492_v50, 0.0  ;;  %4471 = vpow2.f32 %v2696_v24  ;;  %v1784_v3 = vrot.slane %v1776_v52, %v4921_v15  ;;  %v1791_v61 = vrot.slane %v1777_v1, %v4921_v15 }
 0x36e   :  { %2740 = vadd.xlane.f32.xlu0 %v2739_v16  ;;  %1634 = vrot.lane.b32.xlu1 %v4912_v7, %s4697_s3  ;;  %4473 = vpow2.f32 %v2700_v49  ;;  %v1633_v33 = vpop.permute.xlu0 %1632  ;;  %v1844_v49 = vcombine.low %v4912_v7, %v1623_v11 }
 0x36f   :  { %4475 = vpow2.f32 %v2704_v22  ;;  %v1792_v47 = vcombine.low %v5449_v46, %v1633_v33  ;;  %v1793_v13 = vcombine.high %v5449_v46, %v1633_v33 }
 0x370   :  { %v5498_v9 = vpop.eup %4463  ;;  %4477 = vpow2.f32 %v2708_v26  ;;  %v1852_v7 = vrot.slane %v1844_v49, %v4921_v15 }
 0x371   :  { %v2745_v23 = vsel %vm2615_vm2, %v5498_v9, 0.0  ;;  %v1800_v2 = vrot.slane %v1792_v47, %v4921_v15  ;;  %v1807_v41 = vrot.slane %v1793_v13, %v4921_v15 }
 0x372   :  { %2746 = vadd.xlane.f32.xlu0 %v2745_v23 }
 0x373   :  { %v1808_v19 = vcombine.low %v1784_v3, %v1800_v2  ;;  %v1809_v16 = vcombine.high %v1784_v3, %v1800_v2  ;;  %v1824_v12 = vcombine.low %v1791_v61, %v1807_v41 }
 0x374   :  { %v5502_v10 = vpop.eup %4465 }
 0x375   :  { %v2751_v37 = vsel %vm2615_vm2, %v5502_v10, 0.0  ;;  %v1816_v46 = vrot.slane %v1808_v19, %v4924_v18  ;;  %v1832_v48 = vrot.slane %v1824_v12, %v4924_v18 }
 0x376   :  { %2752 = vadd.xlane.f32.xlu0 %v2751_v37  ;;  %v1825_v37 = vcombine.high %v1791_v61, %v1807_v41 }
 0x378   :  { %v5506_v38 = vpop.eup %4467  ;;  %v1839_v17 = vrot.slane %v1825_v37, %v4924_v18 }
 0x379   :  { %v2757_v39 = vsel %vm2615_vm2, %v5506_v38, 0.0  ;;  %v5515_v53 = vpop.eup %4469 }
 0x37a   :  { %2758 = vadd.xlane.f32.xlu0 %v2757_v39  ;;  %v2727_v59 = vsel %vm2615_vm2, %v5515_v53, 0.0  ;;  %v5519_v20 = vpop.eup %4471  ;;  %v1823_v39 = vrot.slane %v1809_v16, %v4924_v18  ;;  %v2064_v57 = vcombine.low %v1832_v48, %v1839_v17 }
 0x37b   :  { %v2736_v35 = vsel %vm2615_vm2, %v5519_v20, 0.0  ;;  %v5523_v21 = vpop.eup %4473 }
 0x37c   :  { %v2742_v30 = vsel %vm2615_vm2, %v5523_v21, 0.0  ;;  %v5527_v28 = vpop.eup %4475  ;;  %v2048_v8 = vcombine.low %v1816_v46, %v1823_v39  ;;  %v4035_v22 = vcombine.high %v1816_v46, %v1823_v39  ;;  %v2071_v11 = vrot.slane %v2064_v57, %v4921_v15 }
 0x37d   :  { %v2748_v56 = vsel %vm2615_vm2, %v5527_v28, 0.0  ;;  %v5531_v58 = vpop.eup %4477 }
 0x37e   :  { %v2754_v4 = vsel %vm2615_vm2, %v5531_v58, 0.0  ;;  %v2063_v44 = vrot.slane %v4035_v22, %v4921_v15 }
 0x392   :  { %2728 = vadd.xlane.f32.xlu1 %v2727_v59 }
 0x396   :  { %2737 = vadd.xlane.f32.xlu1 %v2736_v35 }
 0x39a   :  { %2743 = vadd.xlane.f32.xlu1 %v2742_v30  ;;  %v1859_v30 = vrot.slane %v1845_v60, %v4921_v15 }
 0x39e   :  { %2749 = vadd.xlane.f32.xlu1 %v2748_v56  ;;  %v2055_v56 = vrot.slane %v2048_v8, %v4921_v15 }
 0x3a0   :  { %v2080_v3 = vcombine.low %v2055_v56, %v2063_v44 }
 0x3a2   :  { %2755 = vadd.xlane.f32.xlu1 %v2754_v4 }
 0x3d2   :  { %v2714_v43 = vpop.xlane.xlu1 %2713 }
 0x3d3   :  { %4479 = vrcp.f32 %v2714_v43 }
 0x3d6   :  { %v2717_v5 = vpop.xlane.xlu0 %2716 }
 0x3d7   :  { %4481 = vrcp.f32 %v2717_v5 }
 0x3dc   :  { %v5549_v27 = vpop.xlane.xlu0 %2725 }
 0x3e0   :  { %v4480_v23 = vpop.eup %4479 }
 0x3e1   :  { %v2761_v63 = vmul.f32 %v4480_v23, %v5456_v0  ;;  %v4036_v0 = vcombine.high %v1832_v48, %v1839_v17 }
 0x3e3   :  { %v2079_v33 = vrot.slane %v4036_v0, %v4921_v15 }
 0x3e4   :  { %v4482_v36 = vpop.eup %4481 }
 0x3e5   :  { %v2763_v40 = vmul.f32 %v4482_v36, %v5461_v6  ;;  %v2096_v61 = vcombine.low %v2071_v11, %v2079_v33 }
 0x3e6   :  { %v2720_v24 = vpop.xlane.xlu1 %2719 }
 0x3e7   :  { %v2792_v14 = vpack.c.bf16 %v2763_v40, %v2761_v63  ;;  %v2088_v40 = vrot.slane %v2080_v3, %v4924_v18  ;;  %v2104_v48 = vrot.slane %v2096_v61, %v4924_v18 }
 0x3e9   :  { %4268 = vmatmul.mubr.msk.bf16.vlgmr.msra.gmra.mxu1 %vm2615_vm2, %v2792_v14  ;;  %v2112_v22 = vcombine.low %v2088_v40, %v2104_v48 }
 0x3ea   :  { %v1635_v26 = vpop.permute.xlu1 %1634  ;;  %v2723_v6 = vpop.xlane.xlu0 %2722  ;;  %4278 = vmatpush3.bf16.msra.mxu1 %v5353_v25  ;;  %4279 = vmatprep.mubr.msk.bf16.mxu1 %vm4699_vm0, %v4698_v54 }
 0x3eb   :  { %v1860_v59 = vcombine.low %v5451_v55, %v1635_v26  ;;  %v1861_v35 = vcombine.high %v5451_v55, %v1635_v26  ;;  %4289 = vmatprep.subr.bf16.mxu1 %v4698_v54  ;;  %4483 = vrcp.f32 %v2723_v6 }
 0x3ec   :  { %4485 = vrcp.f32 %v2720_v24 }
 0x3ed   :  { %v1868_v4 = vrot.slane %v1860_v59, %v4921_v15  ;;  %v1875_v25 = vrot.slane %v1861_v35, %v4921_v15 }
 0x3ee   :  { %v2732_v55 = vpop.xlane.xlu0 %2731 }
 0x3ef   :  { %v1876_v43 = vcombine.low %v1852_v7, %v1868_v4  ;;  %v1877_v5 = vcombine.high %v1852_v7, %v1868_v4  ;;  %v1892_v47 = vcombine.low %v1859_v30, %v1875_v25  ;;  %v1893_v13 = vcombine.high %v1859_v30, %v1875_v25 }
 0x3f0   :  { %v2113_v7 = vcombine.high %v2088_v40, %v2104_v48  ;;  %v2081_v30 = vcombine.high %v2055_v56, %v2063_v44  ;;  %v2097_v4 = vcombine.high %v2071_v11, %v2079_v33 }
 0x3f1   :  { %v1884_v52 = vrot.slane %v1876_v43, %v4924_v18  ;;  %v1891_v1 = vrot.slane %v1877_v5, %v4924_v18  ;;  %v1900_v2 = vrot.slane %v1892_v47, %v4924_v18  ;;  %v1907_v41 = vrot.slane %v1893_v13, %v4924_v18 }
 0x3f2   :  { %v2111_v56 = vrot.slane %v2097_v4, %v4924_v18 }
 0x3f3   :  { %v2116_v19 = vcombine.low %v1884_v52, %v1891_v1  ;;  %v4037_v16 = vcombine.high %v1884_v52, %v1891_v1  ;;  %v2132_v23 = vcombine.low %v1900_v2, %v1907_v41  ;;  %v4038_v12 = vcombine.high %v1900_v2, %v1907_v41  ;;  %v2735_v37 = vpop.xlane.xlu0 %2734 }
 0x3f4   :  { %4487 = vrcp.f32 %v2735_v37 }
 0x3f5   :  { %v2123_v36 = vrot.slane %v2116_v19, %v4921_v15  ;;  %v2131_v46 = vrot.slane %v4037_v16, %v4921_v15  ;;  %v2139_v39 = vrot.slane %v2132_v23, %v4921_v15  ;;  %v2147_v63 = vrot.slane %v4038_v12, %v4921_v15 }
 0x3f6   :  { %4489 = vrcp.f32 %v2732_v55 }
 0x3f7   :  { %v2148_v17 = vcombine.low %v2123_v36, %v2131_v46  ;;  %v2164_v24 = vcombine.low %v2139_v39, %v2147_v63  ;;  %v2149_v15 = vcombine.high %v2123_v36, %v2131_v46  ;;  %v2165_v59 = vcombine.high %v2139_v39, %v2147_v63  ;;  %v2741_v2 = vpop.xlane.xlu0 %2740 }
 0x3f8   :  { %v4484_v14 = vpop.eup %4483  ;;  %4491 = vrcp.f32 %v5549_v27 }
 0x3f9   :  { %v2156_v49 = vrot.slane %v2148_v17, %v4924_v18  ;;  %v2172_v60 = vrot.slane %v2164_v24, %v4924_v18  ;;  %v4486_v8 = vpop.eup %4485  ;;  %v2767_v0 = vmul.f32 %v4484_v14, %v5478_v29  ;;  %v2163_v5 = vrot.slane %v2149_v15, %v4924_v18 }
 0x3fa   :  { %v2765_v35 = vmul.f32 %v4486_v8, %v5473_v45  ;;  %v2179_v47 = vrot.slane %v2165_v59, %v4924_v18  ;;  %v2095_v45 = vrot.slane %v2081_v30, %v4924_v18 }
 0x3fb   :  { %v2180_v57 = vcombine.low %v2156_v49, %v2172_v60  ;;  %v2181_v6 = vcombine.high %v2156_v49, %v2172_v60  ;;  %v2747_v18 = vpop.xlane.xlu0 %2746 }
 0x3fc   :  { %v2793_v25 = vpack.c.bf16 %v2767_v0, %v2765_v35  ;;  %v2182_v11 = vcombine.low %v2163_v5, %v2179_v47  ;;  %v2114_v13 = vcombine.low %v2095_v45, %v2111_v56  ;;  %v2183_v48 = vcombine.high %v2163_v5, %v2179_v47  ;;  %v4404_v5 = vld [vmem:[#allocation8 + $0x20] sm:$0xff]  }
 0x3fd   :  { %v2185_v26 = vpack.c.bf16 %v2180_v57, %v2112_v22  ;;  %v2187_v43 = vpack.c.bf16 %v2181_v6, %v2113_v7  ;;  %v2115_v14 = vcombine.high %v2095_v45, %v2111_v56  ;;  %v4399_v22 = vld [vmem:[#allocation8 + $0x8] sm:$0xff]  }
 0x3fe   :  { %v2189_v1 = vpack.c.bf16 %v2182_v11, %v2114_v13 }
 0x3ff   :  { %4272 = vmatpush3.bf16.msra.mxu0 %v2185_v26 }
 0x400   :  { %4283 = vmatprep.subr.bf16.mxu0 %v4698_v54 }
 0x401   :  { %v4488_v55 = vpop.eup %4487 }
 0x402   :  { %4274 = vmatmul.mubr.msk.bf16.vlgmr.msra.gmra.mxu0 %vm2615_vm2, %v2793_v25  ;;  %v2775_v44 = vmul.f32 %v4488_v55, %v5488_v34 }
 0x403   :  { %v4490_v29 = vpop.eup %4489  ;;  %4284 = vmatpush3.bf16.msra.mxu0 %v2187_v43  ;;  %4285 = vmatprep.mubr.msk.bf16.mxu0 %vm4699_vm0, %v4698_v54 }
 0x404   :  { %4295 = vmatprep.subr.bf16.mxu0 %v4698_v54  ;;  %v2773_v33 = vmul.f32 %v4490_v29, %v5483_v31  ;;  %v2753_v31 = vpop.xlane.xlu0 %2752 }
 0x405   :  { %v4492_v61 = vpop.eup %4491 }
 0x406   :  { %v2795_v52 = vpack.c.bf16 %v2775_v44, %v2773_v33  ;;  %v2769_v12 = vmul.f32 %v4492_v61, %v5466_v62 }
 0x408   :  { %v2759_v19 = vpop.xlane.xlu0 %2758 }
 0x40a   :  { %4286 = vmatmul.mubr.msk.bf16.vlgmr.msra.gmra.mxu0 %vm2615_vm2, %v2795_v52 }
 0x40b   :  { %4296 = vmatpush3.bf16.msra.mxu0 %v2189_v1  ;;  %4297 = vmatprep.mubr.msk.bf16.mxu0 %vm4699_vm0, %v4698_v54 }
 0x40c   :  { %4307 = vmatprep.subr.bf16.mxu0 %v4698_v54 }
 0x41b   :  { %v2729_v41 = vpop.xlane.xlu1 %2728 }
 0x41c   :  { %4493 = vrcp.f32 %v2729_v41 }
 0x41f   :  { %v2738_v34 = vpop.xlane.xlu1 %2737 }
 0x420   :  { %4495 = vrcp.f32 %v2738_v34 }
 0x421   :  { %4497 = vrcp.f32 %v2741_v2 }
 0x422   :  { %4499 = vrcp.f32 %v2747_v18  ;;  %v4406_v18 = vld [vmem:[#allocation8 + $0x30] sm:$0xff]  }
 0x423   :  { %v2744_v3 = vpop.xlane.xlu1 %2743 }
 0x424   :  { %4501 = vrcp.f32 %v2744_v3 }
 0x427   :  { %v2750_v16 = vpop.xlane.xlu1 %2749 }
 0x428   :  { %4503 = vrcp.f32 %v2750_v16 }
 0x429   :  { %v4494_v23 = vpop.eup %4493  ;;  %4505 = vrcp.f32 %v2753_v31 }
 0x42a   :  { %4507 = vrcp.f32 %v2759_v19  ;;  %v2771_v27 = vmul.f32 %v4494_v23, %v5515_v53 }
 0x42b   :  { %v2756_v37 = vpop.xlane.xlu1 %2755 }
 0x42c   :  { %4509 = vrcp.f32 %v2756_v37  ;;  %v2794_v36 = vpack.c.bf16 %v2771_v27, %v2769_v12 }
 0x42d   :  { %v4496_v46 = vpop.eup %4495 }
 0x42e   :  { %v4498_v39 = vpop.eup %4497  ;;  %4280 = vmatmul.mubr.msk.bf16.vlgmr.msra.gmra.mxu1 %vm2615_vm2, %v2794_v36  ;;  %v2777_v40 = vmul.f32 %v4496_v46, %v5519_v20  ;;  %v5722_v46 = vmov 0  }
 0x42f   :  { %v4500_v63 = vpop.eup %4499  ;;  %4290 = vmatpush3.bf16.msra.mxu1 %v5355_v42  ;;  %4291 = vmatprep.mubr.msk.bf16.mxu1 %vm4699_vm0, %v4698_v54  ;;  %v2779_v53 = vmul.f32 %v4498_v39, %v5492_v50  ;;  %v2191_v42 = vpack.c.bf16 %v2183_v48, %v2115_v14 }
 0x430   :  { %4301 = vmatprep.subr.bf16.mxu1 %v4698_v54  ;;  %v2783_v24 = vmul.f32 %v4500_v63, %v5498_v9 }
 0x431   :  { %v4502_v62 = vpop.eup %4501  ;;  %v2796_v49 = vpack.c.bf16 %v2779_v53, %v2777_v40 }
 0x432   :  { %v2781_v17 = vmul.f32 %v4502_v62, %v5523_v21 }
 0x434   :  { %v2797_v60 = vpack.c.bf16 %v2783_v24, %v2781_v17 }
 0x435   :  { %v4504_v8 = vpop.eup %4503 }
 0x436   :  { %v4506_v57 = vpop.eup %4505  ;;  %4292 = vmatmul.mubr.msk.bf16.vlgmr.msra.gmra.mxu1 %vm2615_vm2, %v2796_v49  ;;  %4298 = vmatmul.mubr.msk.bf16.vlgmr.msra.gmra.mxu0 %vm2615_vm2, %v2797_v60  ;;  %v2785_v50 = vmul.f32 %v4504_v8, %v5527_v28  ;;  %v4402_v28 = vld [vmem:[#allocation8 + $0x10] sm:$0xff]  }
 0x437   :  { %v4508_v20 = vpop.eup %4507  ;;  %4302 = vmatpush3.bf16.msra.mxu1 %v5357_v51  ;;  %4308 = vmatpush3.bf16.msra.mxu0 %v2191_v42  ;;  %v2787_v21 = vmul.f32 %v4506_v57, %v5502_v10  ;;  %v4400_v51 = vld [vmem:[#allocation8] sm:$0xff]   ;;  %v4403_v10 = vld [vmem:[#allocation8 + $0x28] sm:$0xff]  }
 0x438   :  { %4303 = vmatprep.mubr.msk.bf16.mxu1 %vm4699_vm0, %v4698_v54  ;;  %4309 = vmatprep.mubr.msk.bf16.mxu0 %vm4699_vm0, %v4698_v54  ;;  %v2791_v26 = vmul.f32 %v4508_v20, %v5506_v38  ;;  %v4401_v54 = vld [vmem:[#allocation8 + $0x18] sm:$0xff]  }
 0x439   :  { %v4510_v9 = vpop.eup %4509  ;;  %4313 = vmatprep.subr.bf16.mxu1 %v4399_v22  ;;  %v2798_v6 = vpack.c.bf16 %v2787_v21, %v2785_v50  ;;  %4321 = vmatprep.subr.bf16.mxu0 %v4401_v54 }
 0x43a   :  { %v2789_v0 = vmul.f32 %v4510_v9, %v5531_v58  ;;  %v4405_v58 = vld [vmem:[#allocation8 + $0x38] sm:$0xff]  }
 0x43c   :  { %v2799_v15 = vpack.c.bf16 %v2791_v26, %v2789_v0 }
 0x43e   :  { %4304 = vmatmul.mubr.msk.bf16.vlgmr.msra.gmra.mxu1 %vm2615_vm2, %v2798_v6  ;;  %4310 = vmatmul.mubr.msk.bf16.vlgmr.msra.gmra.mxu0 %vm2615_vm2, %v2799_v15 }
 0x43f   :  { %4314 = vmatpush3.bf16.msra.mxu1 %v4399_v22  ;;  %4322 = vmatpush3.bf16.msra.mxu0 %v4401_v54 }
 0x440   :  { %4315 = vmatprep.subr.bf16.mxu1 %v4400_v51  ;;  %4323 = vmatprep.subr.bf16.mxu0 %v4402_v28 }
 0x443   :  { %4316 = vmatpush3.bf16.msra.mxu1 %v4400_v51  ;;  %4324 = vmatpush3.bf16.msra.mxu0 %v4402_v28 }
 0x444   :  { %4329 = vmatprep.subr.bf16.mxu1 %v4403_v10  ;;  %4337 = vmatprep.subr.bf16.mxu0 %v4405_v58 }
 0x4a9   :  { %v2837_v38 = vpop.f32.mrf.mxu1 }
 0x4ab   :  { %v4269_v59 = vpop.f32.mrf.mxu1 }
 0x4ad   :  { %v2840_v35 = vpop.f32.mrf.mxu1 }
 0x4ae   :  { %v3152_v7 = vpack.c.bf16 %v2840_v35, %v2837_v38  ;;  %v4073_v35 = vld [vmem:[%s5704_s5] ss:$0 sm:$0xff] }
 0x4af   :  { %v4270_v30 = vpop.f32.mrf.mxu1 }
 0x4b0   :  { %4317 = vmatprep.mubr.msk.bf16.mxu1 %vm2192_vm1, %v3152_v7 }
 0x4c2   :  { %v2881_v4 = vpop.f32.mrf.mxu0 }
 0x4c4   :  { %v4275_v25 = vpop.f32.mrf.mxu0 }
 0x4c6   :  { %v2884_v55 = vpop.f32.mrf.mxu0 }
 0x4c7   :  { %v3153_v43 = vpack.c.bf16 %v2884_v55, %v2881_v4 }
 0x4c8   :  { %v4276_v47 = vpop.f32.mrf.mxu0 }
 0x4c9   :  { %4318 = vmatmul.mubr.msk.bf16.vlgmr.msra.gmra.mxu1 %vm2192_vm1, %v3153_v43 }
 0x4ca   :  { %v2969_v29 = vpop.f32.mrf.mxu0  ;;  %4330 = vmatpush3.bf16.msra.mxu1 %v4403_v10 }
 0x4cb   :  { %4331 = vmatprep.subr.bf16.mxu1 %v4404_v5 }
 0x4cc   :  { %v4287_v45 = vpop.f32.mrf.mxu0 }
 0x4ce   :  { %v2972_v56 = vpop.f32.mrf.mxu0  ;;  %4332 = vmatpush3.bf16.msra.mxu1 %v4404_v5 }
 0x4cf   :  { %v3155_v1 = vpack.c.bf16 %v2972_v56, %v2969_v29  ;;  %v4527_v29 = vld [vmem:[#allocation2] sm:$0xff] }
 0x4d0   :  { %v4288_v44 = vpop.f32.mrf.mxu0 }
 0x4ee   :  { %v2925_v11 = vpop.f32.mrf.mxu1 }
 0x4f0   :  { %v4281_v33 = vpop.f32.mrf.mxu1 }
 0x4f2   :  { %v2928_v13 = vpop.f32.mrf.mxu1 }
 0x4f3   :  { %v3154_v52 = vpack.c.bf16 %v2928_v13, %v2925_v11  ;;  %v4528_v11 = vld [vmem:[#allocation2 + $0x10] sm:$0xff]  ;;  %v4529_v13 = vld [vmem:[#allocation2 + $0x8] sm:$0xff] }
 0x4f4   :  { %v4282_v2 = vpop.f32.mrf.mxu1 }
 0x4f5   :  { %4325 = vmatprep.mubr.msk.bf16.mxu0 %vm2192_vm1, %v3154_v52 }
 0x4f6   :  { %v3013_v41 = vpop.f32.mrf.mxu1  ;;  %v3057_v34 = vpop.f32.mrf.mxu0  ;;  %4326 = vmatmul.mubr.msk.bf16.vlgmr.msra.gmra.mxu0 %vm2192_vm1, %v3155_v1  ;;  %v4530_v1 = vld [vmem:[#allocation2 + $0x18] sm:$0xff] }
 0x4f7   :  { %4338 = vmatpush3.bf16.msra.mxu0 %v4405_v58 }
 0x4f8   :  { %v4293_v31 = vpop.f32.mrf.mxu1  ;;  %v4299_v3 = vpop.f32.mrf.mxu0  ;;  %4339 = vmatprep.subr.bf16.mxu0 %v4406_v18 }
 0x4fa   :  { %v3016_v61 = vpop.f32.mrf.mxu1  ;;  %v3060_v19 = vpop.f32.mrf.mxu0 }
 0x4fb   :  { %v3156_v16 = vpack.c.bf16 %v3016_v61, %v3013_v41  ;;  %v3157_v23 = vpack.c.bf16 %v3060_v19, %v3057_v34  ;;  %4340 = vmatpush3.bf16.msra.mxu0 %v4406_v18  ;;  %v4407_v18 = vld [vmem:[#allocation10 + $0x70] ss:$8 sps:$4 sm:$0xff]   ;;  %v4409_v41 = vld [vmem:[#allocation10 + $0x74] ss:$8 sps:$4 sm:$0xff]  }
 0x4fc   :  { %v4294_v12 = vpop.f32.mrf.mxu1  ;;  %v4300_v27 = vpop.f32.mrf.mxu0  ;;  %3648 = vmatprep.subr.bf16.mxu1 %v4409_v41 }
 0x4fd   :  { %4333 = vmatprep.mubr.msk.bf16.mxu1 %vm2192_vm1, %v3156_v16 }
 0x4fe   :  { %v3101_v37 = vpop.f32.mrf.mxu1  ;;  %v3145_v36 = vpop.f32.mrf.mxu0  ;;  %4334 = vmatmul.mubr.msk.bf16.vlgmr.msra.gmra.mxu1 %vm2192_vm1, %v3157_v23 }
 0x4ff   :  { %3680 = vmatprep.mubr.bf16.mxu1 %v5722_v46  ;;  %3649 = vmatpush1.bf16.msra.mxu1 %v4407_v18 }
 0x500   :  { %v4305_v39 = vpop.f32.mrf.mxu1  ;;  %v4311_v63 = vpop.f32.mrf.mxu0 }
 0x502   :  { %v3104_v40 = vpop.f32.mrf.mxu1  ;;  %v3148_v62 = vpop.f32.mrf.mxu0 }
 0x503   :  { %v3158_v48 = vpack.c.bf16 %v3104_v40, %v3101_v37  ;;  %v3159_v53 = vpack.c.bf16 %v3148_v62, %v3145_v36 }
 0x504   :  { %v4306_v17 = vpop.f32.mrf.mxu1  ;;  %v4312_v24 = vpop.f32.mrf.mxu0 }
 0x505   :  { %4341 = vmatprep.mubr.msk.bf16.mxu0 %vm2192_vm1, %v3158_v48  ;;  %v4412_v17 = vld [vmem:[#allocation10 + $0x64] ss:$8 sps:$4 sm:$0xff]   ;;  %v4413_v24 = vld [vmem:[#allocation10 + $0x50] ss:$8 sps:$4 sm:$0xff]  }
 0x506   :  { %4342 = vmatmul.mubr.msk.bf16.vlgmr.msra.gmra.mxu0 %vm2192_vm1, %v3159_v53  ;;  %v4410_v53 = vld [vmem:[#allocation10 + $0x60] ss:$8 sps:$4 sm:$0xff]   ;;  %3650 = vmatprep.subr.bf16.mxu1 %v4412_v17  ;;  %v5723_v17 = vsub.s32 1, %v4810_v32 }
 0x507   :  { %3651 = vmatpush1.bf16.msra.mxu1 %v4410_v53 }
 0x589   :  { %v4319_v14 = vpop.f32.mrf.mxu1 }
 0x58b   :  { %v3228_v49 = vpop.f32.mrf.mxu1 }
 0x58d   :  { %v4320_v60 = vpop.f32.mrf.mxu1 }
 0x58f   :  { %v3231_v42 = vpop.f32.mrf.mxu1 }
 0x5b6   :  { %v4327_v8 = vpop.f32.mrf.mxu0 }
 0x5b7   :  { %v3450_v0 = vadd.f32 %v4327_v8, %v4319_v14  ;;  %v4415_v14 = vld [vmem:[#allocation10 + $0x54] ss:$8 sps:$4 sm:$0xff]  }
 0x5b8   :  { %v3295_v22 = vpop.f32.mrf.mxu0  ;;  %3652 = vmatprep.subr.bf16.mxu1 %v4415_v14  ;;  %v4421_v8 = vld [vmem:[#allocation10 + $0x34] ss:$8 sps:$4 sm:$0xff]   ;;  %v5724_v14 = vsub.s32 0, %v4810_v32 }
 0x5b9   :  { %v3444_v26 = vadd.f32 %v3295_v22, %v3228_v49  ;;  %3653 = vmatpush1.bf16.msra.mxu1 %v4413_v24  ;;  %v4416_v49 = vld [vmem:[#allocation10 + $0x40] ss:$8 sps:$4 sm:$0xff]   ;;  %v4424_v22 = vld [vmem:[#allocation10 + $0x24] ss:$8 sps:$4 sm:$0xff]  }
 0x5ba   :  { %v4328_v20 = vpop.f32.mrf.mxu0 }
 0x5bb   :  { %v3453_v10 = vadd.f32 %v4328_v20, %v4320_v60  ;;  %v4418_v60 = vld [vmem:[#allocation10 + $0x44] ss:$8 sps:$4 sm:$0xff]   ;;  %v4427_v20 = vld [vmem:[#allocation10 + $0x14] ss:$8 sps:$4 sm:$0xff]  }
 0x5bc   :  { %v3298_v9 = vpop.f32.mrf.mxu0  ;;  %3654 = vmatprep.subr.bf16.mxu1 %v4418_v60 }
 0x5bd   :  { %v3447_v58 = vadd.f32 %v3298_v9, %v3231_v42  ;;  %3655 = vmatpush1.bf16.msra.mxu1 %v4416_v49  ;;  %v4419_v42 = vld [vmem:[#allocation10 + $0x30] ss:$8 sps:$4 sm:$0xff]   ;;  %v4430_v9 = vld [vmem:[#allocation10 + $0x4] ss:$8 sps:$4 sm:$0xff]  }
 0x5be   :  { %v4335_v57 = vpop.f32.mrf.mxu1  ;;  %3656 = vmatprep.subr.bf16.mxu1 %v4421_v8 }
 0x5bf   :  { %v3451_v15 = vadd.f32 %v4335_v57, %v3450_v0  ;;  %v4422_v57 = vld [vmem:[#allocation10 + $0x20] ss:$8 sps:$4 sm:$0xff]   ;;  %v4431_v0 = vld [vmem:[#allocation11 + $0x78] sm:$0xff]  }
 0x5c0   :  { %v3362_v50 = vpop.f32.mrf.mxu1  ;;  %4169 = vmatprep.subr.bf16.mxu0 %v4431_v0 }
 0x5c1   :  { %v3445_v51 = vadd.f32 %v3444_v26, %v3362_v50  ;;  %3657 = vmatpush1.bf16.msra.mxu1 %v4419_v42  ;;  %v4425_v50 = vld [vmem:[#allocation10 + $0x10] ss:$8 sps:$4 sm:$0xff]  }
 0x5c2   :  { %v4336_v21 = vpop.f32.mrf.mxu1  ;;  %3658 = vmatprep.subr.bf16.mxu1 %v4424_v22  ;;  %v4432_v26 = vld [vmem:[#allocation11 + $0x38] sm:$0xff]  }
 0x5c3   :  { %v3454_v30 = vadd.f32 %v4336_v21, %v3453_v10  ;;  %v4428_v21 = vld [vmem:[#allocation10] ss:$8 sps:$4 sm:$0xff]   ;;  %4170 = vmatpush3.bf16.msra.mxu0 %v4432_v26 }
 0x5c4   :  { %v3365_v54 = vpop.f32.mrf.mxu1  ;;  %v4438_v10 = vld [vmem:[#allocation11 + $0x20] sm:$0xff]  }
 0x5c5   :  { %v3448_v4 = vadd.f32 %v3447_v58, %v3365_v54  ;;  %3659 = vmatpush1.bf16.msra.mxu1 %v4422_v57  ;;  %v4436_v54 = vld [vmem:[#allocation11 + $0x28] sm:$0xff]   ;;  %v4439_v58 = vld [vmem:[#allocation11 + $0x58] sm:$0xff]  }
 0x5c6   :  { %v4343_v6 = vpop.f32.mrf.mxu0  ;;  %3660 = vmatprep.subr.bf16.mxu1 %v4427_v20 }
 0x5c7   :  { %v3452_v38 = vadd.f32 %v4343_v6, %v3451_v15  ;;  %v4433_v6 = vld [vmem:[#allocation11 + $0x70] sm:$0xff]  }
 0x5c8   :  { %v3429_v28 = vpop.f32.mrf.mxu0  ;;  %v4434_v15 = vld [vmem:[#allocation11 + $0x30] sm:$0xff]   ;;  %4171 = vmatprep.subr.bf16.mxu0 %v4433_v6 }
 0x5c9   :  { %v3446_v59 = vadd.f32 %v3445_v51, %v3429_v28  ;;  %v3465_v43 = vadd.f32 %v4073_v35, %v3452_v38  ;;  %3661 = vmatpush1.bf16.msra.mxu1 %v4425_v50  ;;  %v4435_v51 = vld [vmem:[#allocation11 + $0x68] sm:$0xff]   ;;  %4172 = vmatpush3.bf16.msra.mxu0 %v4434_v15  ;;  %v4437_v28 = vld [vmem:[#allocation11 + $0x60] sm:$0xff]   ;;  %v4440_v38 = vld [vmem:[#allocation11 + $0x18] sm:$0xff]  }
 0x5ca   :  { %v4344_v7 = vpop.f32.mrf.mxu0  ;;  %3662 = vmatprep.subr.bf16.mxu1 %v4430_v9  ;;  %4173 = vmatprep.subr.bf16.mxu0 %v4435_v51 }
 0x5cb   :  { %v3463_v25 = vadd.f32 %v4073_v35, %v3446_v59  ;;  %v3455_v5 = vadd.f32 %v4344_v7, %v3454_v30  ;;  %v3469_v33 = vadd.f32 %v4528_v11, %v3465_v43  ;;  %v4074_v11 = vld [vmem:[%s5705_s6] ss:$0 sm:$0xff] }
 0x5cc   :  { %v3432_v55 = vpop.f32.mrf.mxu0 }
 0x5cd   :  { %v3449_v47 = vadd.f32 %v3448_v4, %v3432_v55  ;;  %v3467_v45 = vadd.f32 %v4527_v29, %v3463_v25  ;;  %v3466_v44 = vadd.f32 %v4073_v35, %v3455_v5  ;;  %3663 = vmatpush1.bf16.msra.mxu1 %v4428_v21  ;;  %4174 = vmatpush3.bf16.msra.mxu0 %v4436_v54 }
 0x5ce   :  { %4175 = vmatprep.subr.bf16.mxu0 %v4437_v28 }
 0x5cf   :  { %v3464_v56 = vadd.f32 %v4073_v35, %v3449_v47  ;;  %3471 = vadd.xlane.f32.xlu1 %v3467_v45  ;;  %v3470_v2 = vadd.f32 %v4530_v1, %v3466_v44 }
 0x5d1   :  { %v3468_v52 = vadd.f32 %v4529_v13, %v3464_v56  ;;  %4176 = vmatpush3.bf16.msra.mxu0 %v4438_v10 }
 0x5d2   :  { %4177 = vmatprep.subr.bf16.mxu0 %v4439_v58 }
 0x5d3   :  { %3475 = vadd.xlane.f32.xlu1 %v3469_v33  ;;  %3473 = vadd.xlane.f32.xlu0 %v3468_v52 }
 0x5d5   :  { %4178 = vmatpush3.bf16.msra.mxu0 %v4440_v38 }
 0x5d7   :  { %3477 = vadd.xlane.f32.xlu0 %v3470_v2 }
 0x658   :  { %v3472_v34 = vpop.xlane.xlu1 %3471 }
 0x659   :  { %v3480_v31 = vmul.f32 0.0078125, %v3472_v34 }
 0x65b   :  { %v5634_v3 = vsub.f32 %v3467_v45, %v3480_v31 }
 0x65c   :  { %v3476_v61 = vpop.xlane.xlu1 %3475  ;;  %v3474_v19 = vpop.xlane.xlu0 %3473 }
 0x65d   :  { %v3482_v16 = vmul.f32 0.0078125, %v3476_v61  ;;  %v3481_v23 = vmul.f32 0.0078125, %v3474_v19  ;;  %v3488_v12 = vmul.f32 %v5634_v3, %v5634_v3 }
 0x65f   :  { %v5638_v27 = vsub.f32 %v3469_v33, %v3482_v16  ;;  %v5640_v37 = vsub.f32 %v3468_v52, %v3481_v23  ;;  %3492 = vadd.xlane.f32.xlu1 %v3488_v12 }
 0x660   :  { %v3478_v36 = vpop.xlane.xlu0 %3477 }
 0x661   :  { %v3483_v39 = vmul.f32 0.0078125, %v3478_v36  ;;  %v3490_v63 = vmul.f32 %v5638_v27, %v5638_v27  ;;  %v3489_v40 = vmul.f32 %v5640_v37, %v5640_v37 }
 0x663   :  { %v5646_v62 = vsub.f32 %v3470_v2, %v3483_v39  ;;  %3496 = vadd.xlane.f32.xlu1 %v3490_v63  ;;  %3494 = vadd.xlane.f32.xlu0 %v3489_v40  ;;  %v4075_v2 = vld [vmem:[%s5706_s7] ss:$0 sm:$0xff]  ;;  %v4441_v39 = vld [vmem:[#allocation11 + $0x50] sm:$0xff]   ;;  %v4444_v40 = vld [vmem:[#allocation11 + $0x8] sm:$0xff]  }
 0x664   :  { %v4442_v63 = vld [vmem:[#allocation11 + $0x10] sm:$0xff]   ;;  %4179 = vmatprep.subr.bf16.mxu0 %v4441_v39 }
 0x665   :  { %v3491_v48 = vmul.f32 %v5646_v62, %v5646_v62  ;;  %4180 = vmatpush3.bf16.msra.mxu0 %v4442_v63 }
 0x667   :  { %3498 = vadd.xlane.f32.xlu0 %v3491_v48  ;;  %v4446_v48 = vld [vmem:[#allocation11] sm:$0xff]  }
 0x6e8   :  { %v3493_v59 = vpop.xlane.xlu1 %3492 }
 0x6e9   :  { %v3500_v35 = vmul.f32 0.0078125, %v3493_v59 }
 0x6eb   :  { %v3504_v7 = vadd.f32 1e-05, %v3500_v35 }
 0x6ec   :  { %v3497_v30 = vpop.xlane.xlu1 %3496  ;;  %v3495_v4 = vpop.xlane.xlu0 %3494 }
 0x6ed   :  { %4511 = vrsqrt.f32 %v3504_v7  ;;  %v3502_v25 = vmul.f32 0.0078125, %v3497_v30  ;;  %v3501_v55 = vmul.f32 0.0078125, %v3495_v4 }
 0x6ef   :  { %v3505_v43 = vadd.f32 1e-05, %v3501_v55  ;;  %v3506_v5 = vadd.f32 1e-05, %v3502_v25 }
 0x6f0   :  { %v3499_v47 = vpop.xlane.xlu0 %3498 }
 0x6f1   :  { %v3503_v29 = vmul.f32 0.0078125, %v3499_v47  ;;  %4513 = vrsqrt.f32 %v3505_v43 }
 0x6f2   :  { %4515 = vrsqrt.f32 %v3506_v5  ;;  %v4092_v5 = vld [vmem:[%s5710_s11] ss:$0 sm:$0xff] }
 0x6f3   :  { %v3507_v45 = vadd.f32 1e-05, %v3503_v29 }
 0x6f5   :  { %4517 = vrsqrt.f32 %v3507_v45 }
 0x6fa   :  { %v4512_v56 = vpop.eup %4511 }
 0x6fb   :  { %v3512_v44 = vmul.f32 %v4512_v56, %v5634_v3 }
 0x6fd   :  { %v3523_v52 = vmul.f32 %v4074_v11, %v3512_v44 }
 0x6fe   :  { %v4514_v33 = vpop.eup %4513 }
 0x6ff   :  { %v3513_v13 = vmul.f32 %v4514_v33, %v5640_v37  ;;  %v4516_v1 = vpop.eup %4515  ;;  %v5659_v31 = vadd.f32 %v4075_v2, %v3523_v52 }
 0x700   :  { %v3514_v61 = vmul.f32 %v4516_v1, %v5638_v27  ;;  %v4443_v27 = vld [vmem:[#allocation11 + $0x48] sm:$0xff]  }
 0x701   :  { %v3524_v41 = vmul.f32 %v4074_v11, %v3513_v13  ;;  %4181 = vmatprep.subr.bf16.mxu0 %v4443_v27 }
 0x702   :  { %v4518_v18 = vpop.eup %4517  ;;  %v3525_v23 = vmul.f32 %v4074_v11, %v3514_v61  ;;  %4182 = vmatpush3.bf16.msra.mxu0 %v4444_v40 }
 0x703   :  { %v3515_v34 = vmul.f32 %v4518_v18, %v5646_v62  ;;  %v5661_v3 = vadd.f32 %v4075_v2, %v3524_v41  ;;  %v4445_v62 = vld [vmem:[#allocation11 + $0x40] sm:$0xff]  }
 0x704   :  { %v5669_v37 = vadd.f32 %v4075_v2, %v3525_v23  ;;  %4183 = vmatprep.subr.bf16.mxu0 %v4445_v62 }
 0x705   :  { %v3538_v19 = vpack.c.bf16 %v5661_v3, %v5659_v31  ;;  %v3526_v16 = vmul.f32 %v4074_v11, %v3515_v34 }
 0x706   :  { %4184 = vmatpush3.bf16.msra.mxu0 %v4446_v48 }
 0x707   :  { %3681 = vmatmul.mubr.bf16.vlgmr.msra.gmra.mxu1 %v3538_v19  ;;  %v5667_v12 = vadd.f32 %v4075_v2, %v3526_v16 }
 0x708   :  { %3690 = vmatprep.mubr.bf16.mxu1 %v5722_v46  ;;  %v3556_v46 = vld [vmem:[%s5708_s9] sm:$0x3] }
 0x709   :  { %v3539_v36 = vpack.c.bf16 %v5667_v12, %v5669_v37  ;;  %v3565_v24 = vrot.slane %v3556_v46, %v5723_v17  ;;  %v3561_v49 = vrot.slane %v3556_v46, %v5724_v14 }
 0x70f   :  { %3691 = vmatmul.mubr.bf16.gmra.mxu1 %v3539_v36 }
 0x7c7   :  { %v3682_v53 = vpop.f32.mrf.mxu1 }
 0x7c8   :  { %v3683_v57 = vadd.f32 %v3682_v53, %v3561_v49 }
 0x7c9   :  { %v3684_v60 = vpop.f32.mrf.mxu1 }
 0x7ca   :  { %v3685_v42 = vadd.f32 %v3684_v60, %v3565_v24  ;;  %v3701_v6 = vmax.f32 %v3683_v57, 0.0 }
 0x7cb   :  { %v3686_v8 = vpop.f32.mrf.mxu1 }
 0x7cc   :  { %v3687_v22 = vadd.f32 %v3686_v8, %v3561_v49  ;;  %v3702_v0 = vmax.f32 %v3685_v42, 0.0 }
 0x7cd   :  { %v3688_v20 = vpop.f32.mrf.mxu1 }
 0x7ce   :  { %v3689_v50 = vadd.f32 %v3688_v20, %v3565_v24  ;;  %v3703_v9 = vmax.f32 %v3687_v22, 0.0 }
 0x7cf   :  { %v3692_v21 = vpop.f32.mrf.mxu1 }
 0x7d0   :  { %v3704_v26 = vmax.f32 %v3689_v50, 0.0  ;;  %v3709_v54 = vpack.c.bf16 %v3703_v9, %v3701_v6  ;;  %v3693_v32 = vadd.f32 %v3692_v21, %v3561_v49 }
 0x7d1   :  { %v3694_v15 = vpop.f32.mrf.mxu1 }
 0x7d2   :  { %v3710_v51 = vpack.c.bf16 %v3704_v26, %v3702_v0  ;;  %v3695_v10 = vadd.f32 %v3694_v15, %v3565_v24  ;;  %v3705_v4 = vmax.f32 %v3693_v32, 0.0 }
 0x7d3   :  { %v3696_v28 = vpop.f32.mrf.mxu1 }
 0x7d4   :  { %v3697_v58 = vadd.f32 %v3696_v28, %v3561_v49  ;;  %3880 = vmatprep.mubr.bf16.mxu0 %v3710_v51  ;;  %v3706_v7 = vmax.f32 %v3695_v10, 0.0  ;;  %v4109_v51 = vld [vmem:[%s5711_s12] ss:$0 sm:$0xff]  ;;  %s4702_s12 = smov [#allocation13]  }
 0x7d5   :  { %v3698_v38 = vpop.f32.mrf.mxu1  ;;  %3881 = vmatmul.mubr.bf16.vlgmr.msra.gmra.mxu0 %v3709_v54  ;;  %v4110_v28 = vld [vmem:[%s5712_s13] ss:$0 sm:$0xff]  ;;  %s3976_s1 = sshll.u32 %s4702_s12, 4  ;;  %s3977_s1 = int_to_ptr.vmem [resolvable:$true] %s3976_s1 }
 0x7d6   :  { %v3699_v59 = vadd.f32 %v3698_v38, %v3565_v24  ;;  %v3707_v35 = vmax.f32 %v3697_v58, 0.0  ;;  %s4651_s13 = scalar_lea.vmem %s3977_s1, 512  ;;  %p4656_p3 = scmp.lt.s32.totalorder %s3977_s1, %s3977_s1 }
 0x7d7   :  { %p4652_p2 = scmp.ne.s32.totalorder %s3977_s1, %s4651_s13  ;;  %p4657_p4 = scmp.lt.s32.totalorder %s4651_s13, %s4651_s13 }
 0x7d8   :  { %v3708_v30 = vmax.f32 %v3699_v59, 0.0  ;;  %v3711_v55 = vpack.c.bf16 %v3707_v35, %v3705_v4 }
 0x7d9   :  { %p4658_p5 = por %p4657_p4, %p4656_p3 }
 0x7da   :  { %v3712_v25 = vpack.c.bf16 %v3708_v30, %v3706_v7 }
 0x7db   :  { %p4659_p6 = pnand %p4658_p5, %p4652_p2 }
 0x7dc   :  { %3888 = vmatprep.mubr.bf16.mxu0 %v3712_v25 }
 0x7dd   :  { %3889 = vmatmul.mubr.bf16.gmra.mxu0 %v3711_v55 }
 0x895   :  { %v4185_v43 = vpop.f32.mrf.mxu0 }
 0x897   :  { %v4186_v47 = vpop.f32.mrf.mxu0 }
 0x898   :  { %v4187_v29 = vadd.f32 %v4186_v47, %v4185_v43 }
 0x899   :  { %v4188_v45 = vpop.f32.mrf.mxu0 }
 0x89a   :  { %v3883_v56 = vadd.f32 %v4187_v29, %v4092_v5 }
 0x89b   :  { %v4189_v44 = vpop.f32.mrf.mxu0 }
 0x89c   :  { %v4190_v11 = vadd.f32 %v4189_v44, %v4188_v45  ;;  %v3897_v33 = vadd.f32 %v3883_v56, %v5659_v31 }
 0x89d   :  { %v4191_v13 = vpop.f32.mrf.mxu0 }
 0x89e   :  { %v3886_v52 = vadd.f32 %v4190_v11, %v4092_v5  ;;  %3901 = vadd.xlane.f32.xlu1 %v3897_v33 }
 0x89f   :  { %v4192_v1 = vpop.f32.mrf.mxu0 }
 0x8a0   :  { %v4193_v2 = vadd.f32 %v4192_v1, %v4191_v13  ;;  %v3898_v18 = vadd.f32 %v3886_v52, %v5661_v3 }
 0x8a1   :  { %v4194_v41 = vpop.f32.mrf.mxu0 }
 0x8a2   :  { %v3891_v34 = vadd.f32 %v4193_v2, %v4092_v5  ;;  %3903 = vadd.xlane.f32.xlu0 %v3898_v18 }
 0x8a3   :  { %v4195_v61 = vpop.f32.mrf.mxu0 }
 0x8a4   :  { %v4196_v19 = vadd.f32 %v4195_v61, %v4194_v41  ;;  %v3899_v16 = vadd.f32 %v3891_v34, %v5669_v37 }
 0x8a6   :  { %v3894_v23 = vadd.f32 %v4196_v19, %v4092_v5  ;;  %3905 = vadd.xlane.f32.xlu1 %v3899_v16 }
 0x8a8   :  { %v3900_v36 = vadd.f32 %v3894_v23, %v5667_v12 }
 0x8aa   :  { %3907 = vadd.xlane.f32.xlu0 %v3900_v36 }
 0x927   :  { %v3902_v31 = vpop.xlane.xlu1 %3901 }
 0x928   :  { %v3909_v39 = vmul.f32 0.0078125, %v3902_v31 }
 0x92a   :  { %v3913_v63 = vsub.f32 %v3897_v33, %v3909_v39 }
 0x92b   :  { %v3904_v27 = vpop.xlane.xlu0 %3903 }
 0x92c   :  { %v3910_v40 = vmul.f32 0.0078125, %v3904_v27  ;;  %v3917_v62 = vmul.f32 %v3913_v63, %v3913_v63 }
 0x92e   :  { %v3914_v48 = vsub.f32 %v3898_v18, %v3910_v40  ;;  %3921 = vadd.xlane.f32.xlu1 %v3917_v62 }
 0x92f   :  { %v3906_v3 = vpop.xlane.xlu1 %3905 }
 0x930   :  { %v3911_v46 = vmul.f32 0.0078125, %v3906_v3  ;;  %v3918_v53 = vmul.f32 %v3914_v48, %v3914_v48 }
 0x932   :  { %v3915_v17 = vsub.f32 %v3899_v16, %v3911_v46  ;;  %3923 = vadd.xlane.f32.xlu0 %v3918_v53 }
 0x933   :  { %v3908_v24 = vpop.xlane.xlu0 %3907 }
 0x934   :  { %v3912_v37 = vmul.f32 0.0078125, %v3908_v24  ;;  %v3919_v14 = vmul.f32 %v3915_v17, %v3915_v17 }
 0x936   :  { %v3916_v49 = vsub.f32 %v3900_v36, %v3912_v37  ;;  %3925 = vadd.xlane.f32.xlu1 %v3919_v14 }
 0x938   :  { %v3920_v12 = vmul.f32 %v3916_v49, %v3916_v49 }
 0x93a   :  { %3927 = vadd.xlane.f32.xlu0 %v3920_v12 }
 0x9b7   :  { %v3922_v60 = vpop.xlane.xlu1 %3921 }
 0x9b8   :  { %v3929_v8 = vmul.f32 0.0078125, %v3922_v60 }
 0x9ba   :  { %v3933_v42 = vadd.f32 1e-05, %v3929_v8 }
 0x9bb   :  { %v3924_v22 = vpop.xlane.xlu0 %3923 }
 0x9bc   :  { %4519 = vrsqrt.f32 %v3933_v42  ;;  %v3930_v57 = vmul.f32 0.0078125, %v3924_v22 }
 0x9be   :  { %v3934_v20 = vadd.f32 1e-05, %v3930_v57 }
 0x9bf   :  { %v3926_v50 = vpop.xlane.xlu1 %3925 }
 0x9c0   :  { %4521 = vrsqrt.f32 %v3934_v20  ;;  %v3931_v9 = vmul.f32 0.0078125, %v3926_v50 }
 0x9c2   :  { %v3935_v21 = vadd.f32 1e-05, %v3931_v9 }
 0x9c3   :  { %v3928_v0 = vpop.xlane.xlu0 %3927 }
 0x9c4   :  { %4523 = vrsqrt.f32 %v3935_v21  ;;  %v3932_v26 = vmul.f32 0.0078125, %v3928_v0 }
 0x9c6   :  { %v3936_v6 = vadd.f32 1e-05, %v3932_v26 }
 0x9c8   :  { %4525 = vrsqrt.f32 %v3936_v6 }
 0x9c9   :  { %v4520_v15 = vpop.eup %4519 }
 0x9ca   :  { %v3941_v54 = vmul.f32 %v4520_v15, %v3913_v63 }
 0x9cc   :  { %v3952_v10 = vmul.f32 %v4109_v51, %v3941_v54 }
 0x9cd   :  { %v4522_v58 = vpop.eup %4521 }
 0x9ce   :  { %v3942_v32 = vmul.f32 %v4522_v58, %v3914_v48  ;;  %v3963_v38 = vadd.f32 %v4110_v28, %v3952_v10 }
 0x9d0   :  { %v3953_v59 = vmul.f32 %v4109_v51, %v3942_v32  ;;  %3967 = vst [vmem:[#allocation13] sm:$0xff] %v3963_v38 }
 0x9d1   :  { %v4524_v35 = vpop.eup %4523 }
 0x9d2   :  { %v3943_v7 = vmul.f32 %v4524_v35, %v3915_v17  ;;  %v3964_v30 = vadd.f32 %v4110_v28, %v3953_v59 }
 0x9d4   :  { %v3954_v4 = vmul.f32 %v4109_v51, %v3943_v7  ;;  %3968 = vst [vmem:[#allocation13 + $0x8] sm:$0xff] %v3964_v30 }
 0x9d5   :  { %v4526_v25 = vpop.eup %4525 }
 0x9d6   :  { %v3944_v55 = vmul.f32 %v4526_v25, %v3916_v49  ;;  %v3965_v43 = vadd.f32 %v4110_v28, %v3954_v4 }
 0x9d8   :  { %v3955_v5 = vmul.f32 %v4109_v51, %v3944_v55  ;;  %3969 = vst [vmem:[#allocation13 + $0x10] sm:$0xff] %v3965_v43 }
 0x9da   :  { %v3966_v47 = vadd.f32 %v4110_v28, %v3955_v5 }
 0x9dc   :  { %3970 = vst [vmem:[#allocation13 + $0x18] sm:$0xff] %v3966_v47 }
 0x9dd   :  { %4662 = shalt.err (!%p4659_p6)
}
 0x9de   :  { %3982 = dma.vmem_to_hbm [thread:$0]  %s3977_s1, 512, %s5713_s14, [#allocation4], %s4688_s29, %s4688_s29, %s4689_s30  }
 0x9df   :  { %4679 = dma.done.wait [#allocation4], 512  }
 0x9e0   :  { %4680 = vsyncadd [#allocation4], 4294966784 }
 0x9e1   :  { %3986 = vsyncpa [#allocation3], 1 }
 0x9e2   :  { %3987 = vsyncpa [#allocation6], 1 }
 0x9e3   :  { %3988 = vsyncpa [#allocation9], 1 }
 0x9e4   :  { %3989 = vsyncpa [#allocation12], 1 }
 0x9e5   :  { %3990 = vsyncpa [#allocation4], 1 }

</bundles_post_ra>
